<compile_context>
chip_gen: v5e
topology: v5e:2x2
jax: 0.10.0
libtpu: 0.0.40
codegen_flags: <defaults>
</compile_context>

<pallas_src>
import functools
import math

import jax
import jax.numpy as jnp
from jax.experimental import pallas as pl
from jax.experimental.pallas import tpu as pltpu


# Tap order (dh-major) matches the folded weight layout below: t = (dh+1)*3 + (dw+1).
_TAPS = tuple((dh, dw) for dh in (-1, 0, 1) for dw in (-1, 0, 1))


# ----------------------------------------------------------------------------
# Fused DCA kernel
# ----------------------------------------------------------------------------
def _dca_kernel(x_ref, masks_ref,
                w1_ref, b1_ref, g1_ref, be1_ref,
                w2_ref, b2_ref, g2_ref, be2_ref,
                wqkv_ref, bqkv_ref,
                o_ref, *, H, W, OC, eps, norm, compute_dtype):
    """Fully fused DCA forward over the whole (small) batch.

    x_ref:     (B, IC, HW)   input, channels on sublanes, HW (lane-dense) on lanes
    masks_ref: (9, HW)       per-tap zero-padding masks (1.0 valid, 0.0 at borders)
    w*_ref:    (Cout, 9*Cin) 3x3 conv weights folded into the contraction dim
    b*/g*/be*: (Cout, 1)     conv bias / BN gamma / BN beta as lane-broadcast columns
    o_ref:     (B, OC, HW)   output (already NCHW once HW is unflattened)
    """
    B = x_ref.shape[0]
    HW = H * W
    masks = masks_ref[...]                                      # (9, HW)

    def conv3x3(x, wf, bias):
        # Build the folded im2col (9*Cin, HW) from cyclic lane shifts + border
        # masks (replicates zero padding), then a single K=9*Cin MXU matmul.
        views = []
        for t, (dh, dw) in enumerate(_TAPS):
            off = dh * W + dw
            if off == 0:
                views.append(x)
            else:
                s = off % HW       # shifted[:, n] = x[:, (n + off) mod HW]
                shifted = jnp.concatenate([x[:, s:], x[:, :s]], axis=1)
                views.append(shifted * masks[t:t + 1])
        patches = jnp.concatenate(views, axis=0)                # (9*Cin, HW)
        acc = jnp.dot(wf.astype(compute_dtype), patches.astype(compute_dtype),
                      preferred_element_type=jnp.float32)       # (Cout, HW)
        return acc + bias

    def batchnorm(ys, gamma, beta, relu):
        # PyTorch training-mode BN: batch statistics over (N, H, W), biased var.
        count = float(len(ys) * HW)
        ssum = ys[0]
        ssq = ys[0] * ys[0]
        for y in ys[1:]:
            ssum = ssum + y
            ssq = ssq + y * y
        mean = jnp.sum(ssum, axis=1, keepdims=True) * (1.0 / count)      # (C, 1)
        var = jnp.sum(ssq, axis=1, keepdims=True) * (1.0 / count) - mean * mean
        scale = gamma * jax.lax.rsqrt(var + eps)
        shift = beta - mean * scale
        outs = [y * scale + shift for y in ys]
        if relu:
            outs = [jnp.maximum(z, 0.0) for z in outs]
        return outs

    w1, b1 = w1_ref[...], b1_ref[...]
    w2, b2 = w2_ref[...], b2_ref[...]
    wqkv, bqkv = wqkv_ref[...], bqkv_ref[...]

    # conv1 -> bn1 -> relu1  (whole batch stays VMEM-resident for the BN stats)
    y1 = [conv3x3(x_ref[i], w1, b1) for i in range(B)]
    z1 = batchnorm(y1, g1_ref[...], be1_ref[...], relu=True)

    # conv2 -> bn2
    y2 = [conv3x3(z, w2, b2) for z in z1]
    z2 = batchnorm(y2, g2_ref[...], be2_ref[...], relu=False)

    # fused q/k/v conv -> channel self-attention -> relu2
    inv_norm = 1.0 / norm
    for i in range(B):
        qkv = conv3x3(z2[i], wqkv, bqkv)                        # (3*OC, HW)
        q, k, v = qkv[:OC], qkv[OC:2 * OC], qkv[2 * OC:]
        # torch: scaled = q(C,HW) @ k(C,HW)^T / norm ; softmax over key channel.
        scores = jnp.dot(q.astype(compute_dtype), k.astype(compute_dtype).T,
                         preferred_element_type=jnp.float32) * inv_norm  # (OC, OC)
        scores = scores - jnp.max(scores, axis=-1, keepdims=True)
        e = jnp.exp(scores)
        attn = e * pl.reciprocal(jnp.sum(e, axis=-1, keepdims=True), approx=True)
        out = jnp.dot(attn.astype(compute_dtype), v.astype(compute_dtype),
                      preferred_element_type=jnp.float32)        # (OC, HW)
        o_ref[i] = jnp.maximum(out, 0.0).astype(o_ref.dtype)     # fused relu2


# ----------------------------------------------------------------------------
# Host-side glue (tiny, one-time): layout folding for weights / masks
# ----------------------------------------------------------------------------
def _tap_masks(h, w):
    """(9, h*w) float masks replicating the conv's zero padding per tap."""
    hc, wc = jnp.meshgrid(jnp.arange(h), jnp.arange(w), indexing='ij')
    hc = hc.reshape(-1)
    wc = wc.reshape(-1)
    rows = []
    for dh, dw in _TAPS:
        ok = ((hc + dh >= 0) & (hc + dh < h) & (wc + dw >= 0) & (wc + dw < w))
        rows.append(ok.astype(jnp.float32))
    return jnp.stack(rows, axis=0)


def _fold_conv_weight(w_hwio):
    """(3,3,Cin,Cout) HWIO -> (Cout, 9*Cin) matching the in-kernel patch order."""
    kh, kw, cin, cout = w_hwio.shape
    return jnp.transpose(w_hwio.reshape(kh * kw, cin, cout),
                         (2, 0, 1)).reshape(cout, kh * kw * cin)


def dca_forward(x_nchw, params, *, compute_dtype=jnp.float32):
    b, ic, h, w = x_nchw.shape
    oc = params['w1'].shape[-1]
    hw = h * w

    x = x_nchw.reshape(b, ic, hw)          # NCHW -> (B, C, HW): contiguous, free
    masks = _tap_masks(h, w)
    w1f = _fold_conv_weight(params['w1'])
    w2f = _fold_conv_weight(params['w2'])
    wqkvf = jnp.concatenate([_fold_conv_weight(params['wq']),
                             _fold_conv_weight(params['wk']),
                             _fold_conv_weight(params['wv'])], axis=0)  # (3*OC, 9*OC)
    bqkv = jnp.concatenate([params['bq'], params['bk'], params['bv']])
    col = lambda p: p.reshape(-1, 1)       # per-channel params as (C, 1) columns

    kernel = functools.partial(
        _dca_kernel, H=h, W=w, OC=oc, eps=1e-5,
        norm=math.sqrt(4.0 * oc), compute_dtype=compute_dtype)

    vmem = pl.BlockSpec(memory_space=pltpu.MemorySpace.VMEM)   # whole array in VMEM
    out = pl.pallas_call(
        kernel,
        out_shape=jax.ShapeDtypeStruct((b, oc, hw), jnp.float32),
        in_specs=[vmem] * 12,
        out_specs=vmem,
    )(x, masks,
      w1f, col(params['b1']), col(params['g1']), col(params['beta1']),
      w2f, col(params['b2']), col(params['g2']), col(params['beta2']),
      wqkvf, col(bqkv))
    return out.reshape(b, oc, h, w)        # (B, OC, HW) is already NCHW order


# ----------------------------------------------------------------------------
# Pure-JAX reference (mirrors the PyTorch module, training-mode BN)
# ----------------------------------------------------------------------------
def dca_reference(x_nchw, params, eps=1e-5):
    hi = jax.lax.Precision.HIGHEST

    def conv(x, w_hwio, bias):
        w_oihw = jnp.transpose(w_hwio, (3, 2, 0, 1))
        y = jax.lax.conv_general_dilated(
            x, w_oihw, window_strides=(1, 1), padding='SAME',
            dimension_numbers=('NCHW', 'OIHW', 'NCHW'), precision=hi)
        return y + bias[None, :, None, None]

    def bn(x, gamma, beta):
        mean = jnp.mean(x, axis=(0, 2, 3), keepdims=True)
        var = jnp.var(x, axis=(0, 2, 3), keepdims=True)
        xhat = (x - mean) / jnp.sqrt(var + eps)
        return xhat * gamma[None, :, None, None] + beta[None, :, None, None]

    x = jnp.maximum(bn(conv(x_nchw, params['w1'], params['b1']),
                       params['g1'], params['beta1']), 0.0)
    x = bn(conv(x, params['w2'], params['b2']), params['g2'], params['beta2'])
    b, c, h, w = x.shape
    q = conv(x, params['wq'], params['bq']).reshape(b, c, h * w)
    k = conv(x, params['wk'], params['bk']).reshape(b, c, h * w)
    v = conv(x, params['wv'], params['bv']).reshape(b, c, h * w)
    s = jnp.einsum('bcn,bdn->bcd', q, k, precision=hi) / math.sqrt(4.0 * c)
    a = jax.nn.softmax(s, axis=-1)
    out = jnp.einsum('bcd,bdn->bcn', a, v, precision=hi).reshape(b, c, h, w)
    return jnp.maximum(out, 0.0)


def init_params(key, ic, oc):
    ks = jax.random.split(key, 10)

    def conv_w(k, cin, cout):
        return 0.1 * jax.random.normal(k, (3, 3, cin, cout), jnp.float32)

    def conv_b(k, cout):
        return 0.1 * jax.random.normal(k, (cout,), jnp.float32)

    return {
        'w1': conv_w(ks[0], ic, oc), 'b1': conv_b(ks[1], oc),
        'w2': conv_w(ks[2], oc, oc), 'b2': conv_b(ks[3], oc),
        'wq': conv_w(ks[4], oc, oc), 'bq': conv_b(ks[5], oc),
        'wk': conv_w(ks[6], oc, oc), 'bk': conv_b(ks[7], oc),
        'wv': conv_w(ks[8], oc, oc), 'bv': conv_b(ks[9], oc),
        # BatchNorm affine params at PyTorch defaults (gamma=1, beta=0)
        'g1': jnp.ones((oc,), jnp.float32), 'beta1': jnp.zeros((oc,), jnp.float32),
        'g2': jnp.ones((oc,), jnp.float32), 'beta2': jnp.zeros((oc,), jnp.float32),
    }


if __name__ == "__main__":
    key = jax.random.PRNGKey(0)
    pkey, xkey = jax.random.split(key)
    B, IC, OC, H, W = 2, 4, 8, 16, 16

    params = init_params(pkey, IC, OC)
    x = jax.random.normal(xkey, (B, IC, H, W), jnp.float32)

    out = dca_forward(x, params)        # compute_dtype=jnp.bfloat16 on v6e/v7x
    out = jax.block_until_ready(out)

    ref = dca_reference(x, params)
    assert out.shape == (B, OC, H, W), out.shape
    assert bool(jnp.all(jnp.isfinite(out)))
    max_err = float(jnp.max(jnp.abs(out - ref)))
    assert max_err < 5e-2, f"mismatch vs reference: max abs err {max_err}"
    print("KERNEL_OK")
</pallas_src>

<mosaic_0001>
module attributes {stable_mosaic.version = 11 : i64} {
  func.func @_dca_kernel(%arg0: memref<2x4x256xf32, #tpu.memory_space<vmem>>, %arg1: memref<9x256xf32, #tpu.memory_space<vmem>>, %arg2: memref<8x36xf32, #tpu.memory_space<vmem>>, %arg3: memref<8x1xf32, #tpu.memory_space<vmem>>, %arg4: memref<8x1xf32, #tpu.memory_space<vmem>>, %arg5: memref<8x1xf32, #tpu.memory_space<vmem>>, %arg6: memref<8x72xf32, #tpu.memory_space<vmem>>, %arg7: memref<8x1xf32, #tpu.memory_space<vmem>>, %arg8: memref<8x1xf32, #tpu.memory_space<vmem>>, %arg9: memref<8x1xf32, #tpu.memory_space<vmem>>, %arg10: memref<24x72xf32, #tpu.memory_space<vmem>>, %arg11: memref<24x1xf32, #tpu.memory_space<vmem>>, %arg12: memref<2x8x256xf32, #tpu.memory_space<vmem>>) attributes {dimension_semantics = [], scalar_prefetch = 0 : i64, scratch_operands = 0 : i64, tpu.core_type = #tpu.core_type<tc>} {
    %c0 = arith.constant 0 : index
    %c0_0 = arith.constant 0 : index
    %0 = vector.load %arg1[%c0, %c0_0] : memref<9x256xf32, #tpu.memory_space<vmem>>, vector<9x256xf32>
    %c0_1 = arith.constant 0 : index
    %c0_2 = arith.constant 0 : index
    %1 = vector.load %arg2[%c0_1, %c0_2] : memref<8x36xf32, #tpu.memory_space<vmem>>, vector<8x36xf32>
    %c0_3 = arith.constant 0 : index
    %c0_4 = arith.constant 0 : index
    %2 = vector.load %arg3[%c0_3, %c0_4] : memref<8x1xf32, #tpu.memory_space<vmem>>, vector<8x1xf32>
    %c0_5 = arith.constant 0 : index
    %c0_6 = arith.constant 0 : index
    %3 = vector.load %arg6[%c0_5, %c0_6] : memref<8x72xf32, #tpu.memory_space<vmem>>, vector<8x72xf32>
    %c0_7 = arith.constant 0 : index
    %c0_8 = arith.constant 0 : index
    %4 = vector.load %arg7[%c0_7, %c0_8] : memref<8x1xf32, #tpu.memory_space<vmem>>, vector<8x1xf32>
    %c0_9 = arith.constant 0 : index
    %c0_10 = arith.constant 0 : index
    %5 = vector.load %arg10[%c0_9, %c0_10] : memref<24x72xf32, #tpu.memory_space<vmem>>, vector<24x72xf32>
    %c0_11 = arith.constant 0 : index
    %c0_12 = arith.constant 0 : index
    %6 = vector.load %arg11[%c0_11, %c0_12] : memref<24x1xf32, #tpu.memory_space<vmem>>, vector<24x1xf32>
    %c0_13 = arith.constant 0 : index
    %c0_14 = arith.constant 0 : index
    %c0_15 = arith.constant 0 : index
    %7 = vector.load %arg0[%c0_13, %c0_14, %c0_15] : memref<2x4x256xf32, #tpu.memory_space<vmem>>, vector<1x4x256xf32>
    %8 = vector.shape_cast %7 : vector<1x4x256xf32> to vector<4x256xf32>
    %9 = vector.extract_strided_slice %8 {offsets = [0, 239], sizes = [4, 17], strides = [1, 1]} : vector<4x256xf32> to vector<4x17xf32>
    %10 = vector.extract_strided_slice %8 {offsets = [0, 0], sizes = [4, 239], strides = [1, 1]} : vector<4x256xf32> to vector<4x239xf32>
    %11 = tpu.concatenate %9, %10 in 1 : vector<4x17xf32>, vector<4x239xf32> -> vector<4x256xf32>
    %12 = vector.extract_strided_slice %0 {offsets = [0, 0], sizes = [1, 256], strides = [1, 1]} : vector<9x256xf32> to vector<1x256xf32>
    %13 = vector.broadcast %12 : vector<1x256xf32> to vector<4x256xf32>
    %14 = arith.mulf %11, %13 : vector<4x256xf32>
    %15 = vector.extract_strided_slice %8 {offsets = [0, 240], sizes = [4, 16], strides = [1, 1]} : vector<4x256xf32> to vector<4x16xf32>
    %16 = vector.extract_strided_slice %8 {offsets = [0, 0], sizes = [4, 240], strides = [1, 1]} : vector<4x256xf32> to vector<4x240xf32>
    %17 = tpu.concatenate %15, %16 in 1 : vector<4x16xf32>, vector<4x240xf32> -> vector<4x256xf32>
    %18 = vector.extract_strided_slice %0 {offsets = [1, 0], sizes = [1, 256], strides = [1, 1]} : vector<9x256xf32> to vector<1x256xf32>
    %19 = vector.broadcast %18 : vector<1x256xf32> to vector<4x256xf32>
    %20 = arith.mulf %17, %19 : vector<4x256xf32>
    %21 = vector.extract_strided_slice %8 {offsets = [0, 241], sizes = [4, 15], strides = [1, 1]} : vector<4x256xf32> to vector<4x15xf32>
    %22 = vector.extract_strided_slice %8 {offsets = [0, 0], sizes = [4, 241], strides = [1, 1]} : vector<4x256xf32> to vector<4x241xf32>
    %23 = tpu.concatenate %21, %22 in 1 : vector<4x15xf32>, vector<4x241xf32> -> vector<4x256xf32>
    %24 = vector.extract_strided_slice %0 {offsets = [2, 0], sizes = [1, 256], strides = [1, 1]} : vector<9x256xf32> to vector<1x256xf32>
    %25 = vector.broadcast %24 : vector<1x256xf32> to vector<4x256xf32>
    %26 = arith.mulf %23, %25 : vector<4x256xf32>
    %27 = vector.extract_strided_slice %8 {offsets = [0, 255], sizes = [4, 1], strides = [1, 1]} : vector<4x256xf32> to vector<4x1xf32>
    %28 = vector.extract_strided_slice %8 {offsets = [0, 0], sizes = [4, 255], strides = [1, 1]} : vector<4x256xf32> to vector<4x255xf32>
    %29 = tpu.concatenate %27, %28 in 1 : vector<4x1xf32>, vector<4x255xf32> -> vector<4x256xf32>
    %30 = vector.extract_strided_slice %0 {offsets = [3, 0], sizes = [1, 256], strides = [1, 1]} : vector<9x256xf32> to vector<1x256xf32>
    %31 = vector.broadcast %30 : vector<1x256xf32> to vector<4x256xf32>
    %32 = arith.mulf %29, %31 : vector<4x256xf32>
    %33 = vector.extract_strided_slice %8 {offsets = [0, 1], sizes = [4, 255], strides = [1, 1]} : vector<4x256xf32> to vector<4x255xf32>
    %34 = vector.extract_strided_slice %8 {offsets = [0, 0], sizes = [4, 1], strides = [1, 1]} : vector<4x256xf32> to vector<4x1xf32>
    %35 = tpu.concatenate %33, %34 in 1 : vector<4x255xf32>, vector<4x1xf32> -> vector<4x256xf32>
    %36 = vector.extract_strided_slice %0 {offsets = [5, 0], sizes = [1, 256], strides = [1, 1]} : vector<9x256xf32> to vector<1x256xf32>
    %37 = vector.broadcast %36 : vector<1x256xf32> to vector<4x256xf32>
    %38 = arith.mulf %35, %37 : vector<4x256xf32>
    %39 = vector.extract_strided_slice %8 {offsets = [0, 15], sizes = [4, 241], strides = [1, 1]} : vector<4x256xf32> to vector<4x241xf32>
    %40 = vector.extract_strided_slice %8 {offsets = [0, 0], sizes = [4, 15], strides = [1, 1]} : vector<4x256xf32> to vector<4x15xf32>
    %41 = tpu.concatenate %39, %40 in 1 : vector<4x241xf32>, vector<4x15xf32> -> vector<4x256xf32>
    %42 = vector.extract_strided_slice %0 {offsets = [6, 0], sizes = [1, 256], strides = [1, 1]} : vector<9x256xf32> to vector<1x256xf32>
    %43 = vector.broadcast %42 : vector<1x256xf32> to vector<4x256xf32>
    %44 = arith.mulf %41, %43 : vector<4x256xf32>
    %45 = vector.extract_strided_slice %8 {offsets = [0, 16], sizes = [4, 240], strides = [1, 1]} : vector<4x256xf32> to vector<4x240xf32>
    %46 = vector.extract_strided_slice %8 {offsets = [0, 0], sizes = [4, 16], strides = [1, 1]} : vector<4x256xf32> to vector<4x16xf32>
    %47 = tpu.concatenate %45, %46 in 1 : vector<4x240xf32>, vector<4x16xf32> -> vector<4x256xf32>
    %48 = vector.extract_strided_slice %0 {offsets = [7, 0], sizes = [1, 256], strides = [1, 1]} : vector<9x256xf32> to vector<1x256xf32>
    %49 = vector.broadcast %48 : vector<1x256xf32> to vector<4x256xf32>
    %50 = arith.mulf %47, %49 : vector<4x256xf32>
    %51 = vector.extract_strided_slice %8 {offsets = [0, 17], sizes = [4, 239], strides = [1, 1]} : vector<4x256xf32> to vector<4x239xf32>
    %52 = vector.extract_strided_slice %8 {offsets = [0, 0], sizes = [4, 17], strides = [1, 1]} : vector<4x256xf32> to vector<4x17xf32>
    %53 = tpu.concatenate %51, %52 in 1 : vector<4x239xf32>, vector<4x17xf32> -> vector<4x256xf32>
    %54 = vector.extract_strided_slice %0 {offsets = [8, 0], sizes = [1, 256], strides = [1, 1]} : vector<9x256xf32> to vector<1x256xf32>
    %55 = vector.broadcast %54 : vector<1x256xf32> to vector<4x256xf32>
    %56 = arith.mulf %53, %55 : vector<4x256xf32>
    %57 = tpu.concatenate %14, %20, %26, %32, %8, %38, %44, %50, %56 in 0 : vector<4x256xf32>, vector<4x256xf32>, vector<4x256xf32>, vector<4x256xf32>, vector<4x256xf32>, vector<4x256xf32>, vector<4x256xf32>, vector<4x256xf32>, vector<4x256xf32> -> vector<36x256xf32>
    %cst = arith.constant dense<0.000000e+00> : vector<8x256xf32>
    %58 = tpu.matmul %1, %57, %cst {dimension_numbers = #tpu.dot_dimension_numbers<[1], [0], [0], [1], [0, 0, 1, 1], [], []>} : vector<8x36xf32>, vector<36x256xf32>, vector<8x256xf32> -> vector<8x256xf32>
    %59 = vector.broadcast %2 : vector<8x1xf32> to vector<8x256xf32>
    %60 = arith.addf %58, %59 : vector<8x256xf32>
    %c1 = arith.constant 1 : index
    %c0_16 = arith.constant 0 : index
    %c0_17 = arith.constant 0 : index
    %61 = vector.load %arg0[%c1, %c0_16, %c0_17] : memref<2x4x256xf32, #tpu.memory_space<vmem>>, vector<1x4x256xf32>
    %62 = vector.shape_cast %61 : vector<1x4x256xf32> to vector<4x256xf32>
    %63 = vector.extract_strided_slice %62 {offsets = [0, 239], sizes = [4, 17], strides = [1, 1]} : vector<4x256xf32> to vector<4x17xf32>
    %64 = vector.extract_strided_slice %62 {offsets = [0, 0], sizes = [4, 239], strides = [1, 1]} : vector<4x256xf32> to vector<4x239xf32>
    %65 = tpu.concatenate %63, %64 in 1 : vector<4x17xf32>, vector<4x239xf32> -> vector<4x256xf32>
    %66 = vector.extract_strided_slice %0 {offsets = [0, 0], sizes = [1, 256], strides = [1, 1]} : vector<9x256xf32> to vector<1x256xf32>
    %67 = vector.broadcast %66 : vector<1x256xf32> to vector<4x256xf32>
    %68 = arith.mulf %65, %67 : vector<4x256xf32>
    %69 = vector.extract_strided_slice %62 {offsets = [0, 240], sizes = [4, 16], strides = [1, 1]} : vector<4x256xf32> to vector<4x16xf32>
    %70 = vector.extract_strided_slice %62 {offsets = [0, 0], sizes = [4, 240], strides = [1, 1]} : vector<4x256xf32> to vector<4x240xf32>
    %71 = tpu.concatenate %69, %70 in 1 : vector<4x16xf32>, vector<4x240xf32> -> vector<4x256xf32>
    %72 = vector.extract_strided_slice %0 {offsets = [1, 0], sizes = [1, 256], strides = [1, 1]} : vector<9x256xf32> to vector<1x256xf32>
    %73 = vector.broadcast %72 : vector<1x256xf32> to vector<4x256xf32>
    %74 = arith.mulf %71, %73 : vector<4x256xf32>
    %75 = vector.extract_strided_slice %62 {offsets = [0, 241], sizes = [4, 15], strides = [1, 1]} : vector<4x256xf32> to vector<4x15xf32>
    %76 = vector.extract_strided_slice %62 {offsets = [0, 0], sizes = [4, 241], strides = [1, 1]} : vector<4x256xf32> to vector<4x241xf32>
    %77 = tpu.concatenate %75, %76 in 1 : vector<4x15xf32>, vector<4x241xf32> -> vector<4x256xf32>
    %78 = vector.extract_strided_slice %0 {offsets = [2, 0], sizes = [1, 256], strides = [1, 1]} : vector<9x256xf32> to vector<1x256xf32>
    %79 = vector.broadcast %78 : vector<1x256xf32> to vector<4x256xf32>
    %80 = arith.mulf %77, %79 : vector<4x256xf32>
    %81 = vector.extract_strided_slice %62 {offsets = [0, 255], sizes = [4, 1], strides = [1, 1]} : vector<4x256xf32> to vector<4x1xf32>
    %82 = vector.extract_strided_slice %62 {offsets = [0, 0], sizes = [4, 255], strides = [1, 1]} : vector<4x256xf32> to vector<4x255xf32>
    %83 = tpu.concatenate %81, %82 in 1 : vector<4x1xf32>, vector<4x255xf32> -> vector<4x256xf32>
    %84 = vector.extract_strided_slice %0 {offsets = [3, 0], sizes = [1, 256], strides = [1, 1]} : vector<9x256xf32> to vector<1x256xf32>
    %85 = vector.broadcast %84 : vector<1x256xf32> to vector<4x256xf32>
    %86 = arith.mulf %83, %85 : vector<4x256xf32>
    %87 = vector.extract_strided_slice %62 {offsets = [0, 1], sizes = [4, 255], strides = [1, 1]} : vector<4x256xf32> to vector<4x255xf32>
    %88 = vector.extract_strided_slice %62 {offsets = [0, 0], sizes = [4, 1], strides = [1, 1]} : vector<4x256xf32> to vector<4x1xf32>
    %89 = tpu.concatenate %87, %88 in 1 : vector<4x255xf32>, vector<4x1xf32> -> vector<4x256xf32>
    %90 = vector.extract_strided_slice %0 {offsets = [5, 0], sizes = [1, 256], strides = [1, 1]} : vector<9x256xf32> to vector<1x256xf32>
    %91 = vector.broadcast %90 : vector<1x256xf32> to vector<4x256xf32>
    %92 = arith.mulf %89, %91 : vector<4x256xf32>
    %93 = vector.extract_strided_slice %62 {offsets = [0, 15], sizes = [4, 241], strides = [1, 1]} : vector<4x256xf32> to vector<4x241xf32>
    %94 = vector.extract_strided_slice %62 {offsets = [0, 0], sizes = [4, 15], strides = [1, 1]} : vector<4x256xf32> to vector<4x15xf32>
    %95 = tpu.concatenate %93, %94 in 1 : vector<4x241xf32>, vector<4x15xf32> -> vector<4x256xf32>
    %96 = vector.extract_strided_slice %0 {offsets = [6, 0], sizes = [1, 256], strides = [1, 1]} : vector<9x256xf32> to vector<1x256xf32>
    %97 = vector.broadcast %96 : vector<1x256xf32> to vector<4x256xf32>
    %98 = arith.mulf %95, %97 : vector<4x256xf32>
    %99 = vector.extract_strided_slice %62 {offsets = [0, 16], sizes = [4, 240], strides = [1, 1]} : vector<4x256xf32> to vector<4x240xf32>
    %100 = vector.extract_strided_slice %62 {offsets = [0, 0], sizes = [4, 16], strides = [1, 1]} : vector<4x256xf32> to vector<4x16xf32>
    %101 = tpu.concatenate %99, %100 in 1 : vector<4x240xf32>, vector<4x16xf32> -> vector<4x256xf32>
    %102 = vector.extract_strided_slice %0 {offsets = [7, 0], sizes = [1, 256], strides = [1, 1]} : vector<9x256xf32> to vector<1x256xf32>
    %103 = vector.broadcast %102 : vector<1x256xf32> to vector<4x256xf32>
    %104 = arith.mulf %101, %103 : vector<4x256xf32>
    %105 = vector.extract_strided_slice %62 {offsets = [0, 17], sizes = [4, 239], strides = [1, 1]} : vector<4x256xf32> to vector<4x239xf32>
    %106 = vector.extract_strided_slice %62 {offsets = [0, 0], sizes = [4, 17], strides = [1, 1]} : vector<4x256xf32> to vector<4x17xf32>
    %107 = tpu.concatenate %105, %106 in 1 : vector<4x239xf32>, vector<4x17xf32> -> vector<4x256xf32>
    %108 = vector.extract_strided_slice %0 {offsets = [8, 0], sizes = [1, 256], strides = [1, 1]} : vector<9x256xf32> to vector<1x256xf32>
    %109 = vector.broadcast %108 : vector<1x256xf32> to vector<4x256xf32>
    %110 = arith.mulf %107, %109 : vector<4x256xf32>
    %111 = tpu.concatenate %68, %74, %80, %86, %62, %92, %98, %104, %110 in 0 : vector<4x256xf32>, vector<4x256xf32>, vector<4x256xf32>, vector<4x256xf32>, vector<4x256xf32>, vector<4x256xf32>, vector<4x256xf32>, vector<4x256xf32>, vector<4x256xf32> -> vector<36x256xf32>
    %cst_18 = arith.constant dense<0.000000e+00> : vector<8x256xf32>
    %112 = tpu.matmul %1, %111, %cst_18 {dimension_numbers = #tpu.dot_dimension_numbers<[1], [0], [0], [1], [0, 0, 1, 1], [], []>} : vector<8x36xf32>, vector<36x256xf32>, vector<8x256xf32> -> vector<8x256xf32>
    %113 = vector.broadcast %2 : vector<8x1xf32> to vector<8x256xf32>
    %114 = arith.addf %112, %113 : vector<8x256xf32>
    %c0_19 = arith.constant 0 : index
    %c0_20 = arith.constant 0 : index
    %115 = vector.load %arg4[%c0_19, %c0_20] : memref<8x1xf32, #tpu.memory_space<vmem>>, vector<8x1xf32>
    %c0_21 = arith.constant 0 : index
    %c0_22 = arith.constant 0 : index
    %116 = vector.load %arg5[%c0_21, %c0_22] : memref<8x1xf32, #tpu.memory_space<vmem>>, vector<8x1xf32>
    %117 = arith.mulf %60, %60 : vector<8x256xf32>
    %118 = arith.addf %60, %114 : vector<8x256xf32>
    %119 = arith.mulf %114, %114 : vector<8x256xf32>
    %120 = arith.addf %117, %119 : vector<8x256xf32>
    %cst_23 = arith.constant dense<0.000000e+00> : vector<8xf32>
    %121 = vector.multi_reduction <add>, %118, %cst_23 [1] : vector<8x256xf32> to vector<8xf32>
    %122 = vector.shape_cast %121 : vector<8xf32> to vector<8x1xf32>
    %cst_24 = arith.constant 0.001953125 : f32
    %123 = vector.broadcast %cst_24 : f32 to vector<8x1xf32>
    %124 = arith.mulf %122, %123 : vector<8x1xf32>
    %cst_25 = arith.constant dense<0.000000e+00> : vector<8xf32>
    %125 = vector.multi_reduction <add>, %120, %cst_25 [1] : vector<8x256xf32> to vector<8xf32>
    %126 = vector.shape_cast %125 : vector<8xf32> to vector<8x1xf32>
    %cst_26 = arith.constant 0.001953125 : f32
    %127 = vector.broadcast %cst_26 : f32 to vector<8x1xf32>
    %128 = arith.mulf %126, %127 : vector<8x1xf32>
    %129 = arith.mulf %124, %124 : vector<8x1xf32>
    %130 = arith.subf %128, %129 : vector<8x1xf32>
    %cst_27 = arith.constant 9.99999974E-6 : f32
    %131 = vector.broadcast %cst_27 : f32 to vector<8x1xf32>
    %132 = arith.addf %130, %131 : vector<8x1xf32>
    %133 = math.rsqrt %132 : vector<8x1xf32>
    %134 = arith.mulf %115, %133 : vector<8x1xf32>
    %135 = arith.mulf %124, %134 : vector<8x1xf32>
    %136 = arith.subf %116, %135 : vector<8x1xf32>
    %137 = vector.broadcast %134 : vector<8x1xf32> to vector<8x256xf32>
    %138 = arith.mulf %60, %137 : vector<8x256xf32>
    %139 = vector.broadcast %136 : vector<8x1xf32> to vector<8x256xf32>
    %140 = arith.addf %138, %139 : vector<8x256xf32>
    %141 = vector.broadcast %134 : vector<8x1xf32> to vector<8x256xf32>
    %142 = arith.mulf %114, %141 : vector<8x256xf32>
    %143 = vector.broadcast %136 : vector<8x1xf32> to vector<8x256xf32>
    %144 = arith.addf %142, %143 : vector<8x256xf32>
    %cst_28 = arith.constant 0.000000e+00 : f32
    %145 = vector.broadcast %cst_28 : f32 to vector<8x256xf32>
    %146 = arith.maximumf %140, %145 : vector<8x256xf32>
    %cst_29 = arith.constant 0.000000e+00 : f32
    %147 = vector.broadcast %cst_29 : f32 to vector<8x256xf32>
    %148 = arith.maximumf %144, %147 : vector<8x256xf32>
    %149 = vector.extract_strided_slice %146 {offsets = [0, 239], sizes = [8, 17], strides = [1, 1]} : vector<8x256xf32> to vector<8x17xf32>
    %150 = vector.extract_strided_slice %146 {offsets = [0, 0], sizes = [8, 239], strides = [1, 1]} : vector<8x256xf32> to vector<8x239xf32>
    %151 = tpu.concatenate %149, %150 in 1 : vector<8x17xf32>, vector<8x239xf32> -> vector<8x256xf32>
    %152 = vector.extract_strided_slice %0 {offsets = [0, 0], sizes = [1, 256], strides = [1, 1]} : vector<9x256xf32> to vector<1x256xf32>
    %153 = vector.broadcast %152 : vector<1x256xf32> to vector<8x256xf32>
    %154 = arith.mulf %151, %153 : vector<8x256xf32>
    %155 = vector.extract_strided_slice %146 {offsets = [0, 240], sizes = [8, 16], strides = [1, 1]} : vector<8x256xf32> to vector<8x16xf32>
    %156 = vector.extract_strided_slice %146 {offsets = [0, 0], sizes = [8, 240], strides = [1, 1]} : vector<8x256xf32> to vector<8x240xf32>
    %157 = tpu.concatenate %155, %156 in 1 : vector<8x16xf32>, vector<8x240xf32> -> vector<8x256xf32>
    %158 = vector.extract_strided_slice %0 {offsets = [1, 0], sizes = [1, 256], strides = [1, 1]} : vector<9x256xf32> to vector<1x256xf32>
    %159 = vector.broadcast %158 : vector<1x256xf32> to vector<8x256xf32>
    %160 = arith.mulf %157, %159 : vector<8x256xf32>
    %161 = vector.extract_strided_slice %146 {offsets = [0, 241], sizes = [8, 15], strides = [1, 1]} : vector<8x256xf32> to vector<8x15xf32>
    %162 = vector.extract_strided_slice %146 {offsets = [0, 0], sizes = [8, 241], strides = [1, 1]} : vector<8x256xf32> to vector<8x241xf32>
    %163 = tpu.concatenate %161, %162 in 1 : vector<8x15xf32>, vector<8x241xf32> -> vector<8x256xf32>
    %164 = vector.extract_strided_slice %0 {offsets = [2, 0], sizes = [1, 256], strides = [1, 1]} : vector<9x256xf32> to vector<1x256xf32>
    %165 = vector.broadcast %164 : vector<1x256xf32> to vector<8x256xf32>
    %166 = arith.mulf %163, %165 : vector<8x256xf32>
    %167 = vector.extract_strided_slice %146 {offsets = [0, 255], sizes = [8, 1], strides = [1, 1]} : vector<8x256xf32> to vector<8x1xf32>
    %168 = vector.extract_strided_slice %146 {offsets = [0, 0], sizes = [8, 255], strides = [1, 1]} : vector<8x256xf32> to vector<8x255xf32>
    %169 = tpu.concatenate %167, %168 in 1 : vector<8x1xf32>, vector<8x255xf32> -> vector<8x256xf32>
    %170 = vector.extract_strided_slice %0 {offsets = [3, 0], sizes = [1, 256], strides = [1, 1]} : vector<9x256xf32> to vector<1x256xf32>
    %171 = vector.broadcast %170 : vector<1x256xf32> to vector<8x256xf32>
    %172 = arith.mulf %169, %171 : vector<8x256xf32>
    %173 = vector.extract_strided_slice %146 {offsets = [0, 1], sizes = [8, 255], strides = [1, 1]} : vector<8x256xf32> to vector<8x255xf32>
    %174 = vector.extract_strided_slice %146 {offsets = [0, 0], sizes = [8, 1], strides = [1, 1]} : vector<8x256xf32> to vector<8x1xf32>
    %175 = tpu.concatenate %173, %174 in 1 : vector<8x255xf32>, vector<8x1xf32> -> vector<8x256xf32>
    %176 = vector.extract_strided_slice %0 {offsets = [5, 0], sizes = [1, 256], strides = [1, 1]} : vector<9x256xf32> to vector<1x256xf32>
    %177 = vector.broadcast %176 : vector<1x256xf32> to vector<8x256xf32>
    %178 = arith.mulf %175, %177 : vector<8x256xf32>
    %179 = vector.extract_strided_slice %146 {offsets = [0, 15], sizes = [8, 241], strides = [1, 1]} : vector<8x256xf32> to vector<8x241xf32>
    %180 = vector.extract_strided_slice %146 {offsets = [0, 0], sizes = [8, 15], strides = [1, 1]} : vector<8x256xf32> to vector<8x15xf32>
    %181 = tpu.concatenate %179, %180 in 1 : vector<8x241xf32>, vector<8x15xf32> -> vector<8x256xf32>
    %182 = vector.extract_strided_slice %0 {offsets = [6, 0], sizes = [1, 256], strides = [1, 1]} : vector<9x256xf32> to vector<1x256xf32>
    %183 = vector.broadcast %182 : vector<1x256xf32> to vector<8x256xf32>
    %184 = arith.mulf %181, %183 : vector<8x256xf32>
    %185 = vector.extract_strided_slice %146 {offsets = [0, 16], sizes = [8, 240], strides = [1, 1]} : vector<8x256xf32> to vector<8x240xf32>
    %186 = vector.extract_strided_slice %146 {offsets = [0, 0], sizes = [8, 16], strides = [1, 1]} : vector<8x256xf32> to vector<8x16xf32>
    %187 = tpu.concatenate %185, %186 in 1 : vector<8x240xf32>, vector<8x16xf32> -> vector<8x256xf32>
    %188 = vector.extract_strided_slice %0 {offsets = [7, 0], sizes = [1, 256], strides = [1, 1]} : vector<9x256xf32> to vector<1x256xf32>
    %189 = vector.broadcast %188 : vector<1x256xf32> to vector<8x256xf32>
    %190 = arith.mulf %187, %189 : vector<8x256xf32>
    %191 = vector.extract_strided_slice %146 {offsets = [0, 17], sizes = [8, 239], strides = [1, 1]} : vector<8x256xf32> to vector<8x239xf32>
    %192 = vector.extract_strided_slice %146 {offsets = [0, 0], sizes = [8, 17], strides = [1, 1]} : vector<8x256xf32> to vector<8x17xf32>
    %193 = tpu.concatenate %191, %192 in 1 : vector<8x239xf32>, vector<8x17xf32> -> vector<8x256xf32>
    %194 = vector.extract_strided_slice %0 {offsets = [8, 0], sizes = [1, 256], strides = [1, 1]} : vector<9x256xf32> to vector<1x256xf32>
    %195 = vector.broadcast %194 : vector<1x256xf32> to vector<8x256xf32>
    %196 = arith.mulf %193, %195 : vector<8x256xf32>
    %197 = tpu.concatenate %154, %160, %166, %172, %146, %178, %184, %190, %196 in 0 : vector<8x256xf32>, vector<8x256xf32>, vector<8x256xf32>, vector<8x256xf32>, vector<8x256xf32>, vector<8x256xf32>, vector<8x256xf32>, vector<8x256xf32>, vector<8x256xf32> -> vector<72x256xf32>
    %cst_30 = arith.constant dense<0.000000e+00> : vector<8x256xf32>
    %198 = tpu.matmul %3, %197, %cst_30 {dimension_numbers = #tpu.dot_dimension_numbers<[1], [0], [0], [1], [0, 0, 1, 1], [], []>} : vector<8x72xf32>, vector<72x256xf32>, vector<8x256xf32> -> vector<8x256xf32>
    %199 = vector.broadcast %4 : vector<8x1xf32> to vector<8x256xf32>
    %200 = arith.addf %198, %199 : vector<8x256xf32>
    %201 = vector.extract_strided_slice %148 {offsets = [0, 239], sizes = [8, 17], strides = [1, 1]} : vector<8x256xf32> to vector<8x17xf32>
    %202 = vector.extract_strided_slice %148 {offsets = [0, 0], sizes = [8, 239], strides = [1, 1]} : vector<8x256xf32> to vector<8x239xf32>
    %203 = tpu.concatenate %201, %202 in 1 : vector<8x17xf32>, vector<8x239xf32> -> vector<8x256xf32>
    %204 = vector.extract_strided_slice %0 {offsets = [0, 0], sizes = [1, 256], strides = [1, 1]} : vector<9x256xf32> to vector<1x256xf32>
    %205 = vector.broadcast %204 : vector<1x256xf32> to vector<8x256xf32>
    %206 = arith.mulf %203, %205 : vector<8x256xf32>
    %207 = vector.extract_strided_slice %148 {offsets = [0, 240], sizes = [8, 16], strides = [1, 1]} : vector<8x256xf32> to vector<8x16xf32>
    %208 = vector.extract_strided_slice %148 {offsets = [0, 0], sizes = [8, 240], strides = [1, 1]} : vector<8x256xf32> to vector<8x240xf32>
    %209 = tpu.concatenate %207, %208 in 1 : vector<8x16xf32>, vector<8x240xf32> -> vector<8x256xf32>
    %210 = vector.extract_strided_slice %0 {offsets = [1, 0], sizes = [1, 256], strides = [1, 1]} : vector<9x256xf32> to vector<1x256xf32>
    %211 = vector.broadcast %210 : vector<1x256xf32> to vector<8x256xf32>
    %212 = arith.mulf %209, %211 : vector<8x256xf32>
    %213 = vector.extract_strided_slice %148 {offsets = [0, 241], sizes = [8, 15], strides = [1, 1]} : vector<8x256xf32> to vector<8x15xf32>
    %214 = vector.extract_strided_slice %148 {offsets = [0, 0], sizes = [8, 241], strides = [1, 1]} : vector<8x256xf32> to vector<8x241xf32>
    %215 = tpu.concatenate %213, %214 in 1 : vector<8x15xf32>, vector<8x241xf32> -> vector<8x256xf32>
    %216 = vector.extract_strided_slice %0 {offsets = [2, 0], sizes = [1, 256], strides = [1, 1]} : vector<9x256xf32> to vector<1x256xf32>
    %217 = vector.broadcast %216 : vector<1x256xf32> to vector<8x256xf32>
    %218 = arith.mulf %215, %217 : vector<8x256xf32>
    %219 = vector.extract_strided_slice %148 {offsets = [0, 255], sizes = [8, 1], strides = [1, 1]} : vector<8x256xf32> to vector<8x1xf32>
    %220 = vector.extract_strided_slice %148 {offsets = [0, 0], sizes = [8, 255], strides = [1, 1]} : vector<8x256xf32> to vector<8x255xf32>
    %221 = tpu.concatenate %219, %220 in 1 : vector<8x1xf32>, vector<8x255xf32> -> vector<8x256xf32>
    %222 = vector.extract_strided_slice %0 {offsets = [3, 0], sizes = [1, 256], strides = [1, 1]} : vector<9x256xf32> to vector<1x256xf32>
    %223 = vector.broadcast %222 : vector<1x256xf32> to vector<8x256xf32>
    %224 = arith.mulf %221, %223 : vector<8x256xf32>
    %225 = vector.extract_strided_slice %148 {offsets = [0, 1], sizes = [8, 255], strides = [1, 1]} : vector<8x256xf32> to vector<8x255xf32>
    %226 = vector.extract_strided_slice %148 {offsets = [0, 0], sizes = [8, 1], strides = [1, 1]} : vector<8x256xf32> to vector<8x1xf32>
    %227 = tpu.concatenate %225, %226 in 1 : vector<8x255xf32>, vector<8x1xf32> -> vector<8x256xf32>
    %228 = vector.extract_strided_slice %0 {offsets = [5, 0], sizes = [1, 256], strides = [1, 1]} : vector<9x256xf32> to vector<1x256xf32>
    %229 = vector.broadcast %228 : vector<1x256xf32> to vector<8x256xf32>
    %230 = arith.mulf %227, %229 : vector<8x256xf32>
    %231 = vector.extract_strided_slice %148 {offsets = [0, 15], sizes = [8, 241], strides = [1, 1]} : vector<8x256xf32> to vector<8x241xf32>
    %232 = vector.extract_strided_slice %148 {offsets = [0, 0], sizes = [8, 15], strides = [1, 1]} : vector<8x256xf32> to vector<8x15xf32>
    %233 = tpu.concatenate %231, %232 in 1 : vector<8x241xf32>, vector<8x15xf32> -> vector<8x256xf32>
    %234 = vector.extract_strided_slice %0 {offsets = [6, 0], sizes = [1, 256], strides = [1, 1]} : vector<9x256xf32> to vector<1x256xf32>
    %235 = vector.broadcast %234 : vector<1x256xf32> to vector<8x256xf32>
    %236 = arith.mulf %233, %235 : vector<8x256xf32>
    %237 = vector.extract_strided_slice %148 {offsets = [0, 16], sizes = [8, 240], strides = [1, 1]} : vector<8x256xf32> to vector<8x240xf32>
    %238 = vector.extract_strided_slice %148 {offsets = [0, 0], sizes = [8, 16], strides = [1, 1]} : vector<8x256xf32> to vector<8x16xf32>
    %239 = tpu.concatenate %237, %238 in 1 : vector<8x240xf32>, vector<8x16xf32> -> vector<8x256xf32>
    %240 = vector.extract_strided_slice %0 {offsets = [7, 0], sizes = [1, 256], strides = [1, 1]} : vector<9x256xf32> to vector<1x256xf32>
    %241 = vector.broadcast %240 : vector<1x256xf32> to vector<8x256xf32>
    %242 = arith.mulf %239, %241 : vector<8x256xf32>
    %243 = vector.extract_strided_slice %148 {offsets = [0, 17], sizes = [8, 239], strides = [1, 1]} : vector<8x256xf32> to vector<8x239xf32>
    %244 = vector.extract_strided_slice %148 {offsets = [0, 0], sizes = [8, 17], strides = [1, 1]} : vector<8x256xf32> to vector<8x17xf32>
    %245 = tpu.concatenate %243, %244 in 1 : vector<8x239xf32>, vector<8x17xf32> -> vector<8x256xf32>
    %246 = vector.extract_strided_slice %0 {offsets = [8, 0], sizes = [1, 256], strides = [1, 1]} : vector<9x256xf32> to vector<1x256xf32>
    %247 = vector.broadcast %246 : vector<1x256xf32> to vector<8x256xf32>
    %248 = arith.mulf %245, %247 : vector<8x256xf32>
    %249 = tpu.concatenate %206, %212, %218, %224, %148, %230, %236, %242, %248 in 0 : vector<8x256xf32>, vector<8x256xf32>, vector<8x256xf32>, vector<8x256xf32>, vector<8x256xf32>, vector<8x256xf32>, vector<8x256xf32>, vector<8x256xf32>, vector<8x256xf32> -> vector<72x256xf32>
    %cst_31 = arith.constant dense<0.000000e+00> : vector<8x256xf32>
    %250 = tpu.matmul %3, %249, %cst_31 {dimension_numbers = #tpu.dot_dimension_numbers<[1], [0], [0], [1], [0, 0, 1, 1], [], []>} : vector<8x72xf32>, vector<72x256xf32>, vector<8x256xf32> -> vector<8x256xf32>
    %251 = vector.broadcast %4 : vector<8x1xf32> to vector<8x256xf32>
    %252 = arith.addf %250, %251 : vector<8x256xf32>
    %c0_32 = arith.constant 0 : index
    %c0_33 = arith.constant 0 : index
    %253 = vector.load %arg8[%c0_32, %c0_33] : memref<8x1xf32, #tpu.memory_space<vmem>>, vector<8x1xf32>
    %c0_34 = arith.constant 0 : index
    %c0_35 = arith.constant 0 : index
    %254 = vector.load %arg9[%c0_34, %c0_35] : memref<8x1xf32, #tpu.memory_space<vmem>>, vector<8x1xf32>
    %255 = arith.mulf %200, %200 : vector<8x256xf32>
    %256 = arith.addf %200, %252 : vector<8x256xf32>
    %257 = arith.mulf %252, %252 : vector<8x256xf32>
    %258 = arith.addf %255, %257 : vector<8x256xf32>
    %cst_36 = arith.constant dense<0.000000e+00> : vector<8xf32>
    %259 = vector.multi_reduction <add>, %256, %cst_36 [1] : vector<8x256xf32> to vector<8xf32>
    %260 = vector.shape_cast %259 : vector<8xf32> to vector<8x1xf32>
    %cst_37 = arith.constant 0.001953125 : f32
    %261 = vector.broadcast %cst_37 : f32 to vector<8x1xf32>
    %262 = arith.mulf %260, %261 : vector<8x1xf32>
    %cst_38 = arith.constant dense<0.000000e+00> : vector<8xf32>
    %263 = vector.multi_reduction <add>, %258, %cst_38 [1] : vector<8x256xf32> to vector<8xf32>
    %264 = vector.shape_cast %263 : vector<8xf32> to vector<8x1xf32>
    %cst_39 = arith.constant 0.001953125 : f32
    %265 = vector.broadcast %cst_39 : f32 to vector<8x1xf32>
    %266 = arith.mulf %264, %265 : vector<8x1xf32>
    %267 = arith.mulf %262, %262 : vector<8x1xf32>
    %268 = arith.subf %266, %267 : vector<8x1xf32>
    %cst_40 = arith.constant 9.99999974E-6 : f32
    %269 = vector.broadcast %cst_40 : f32 to vector<8x1xf32>
    %270 = arith.addf %268, %269 : vector<8x1xf32>
    %271 = math.rsqrt %270 : vector<8x1xf32>
    %272 = arith.mulf %253, %271 : vector<8x1xf32>
    %273 = arith.mulf %262, %272 : vector<8x1xf32>
    %274 = arith.subf %254, %273 : vector<8x1xf32>
    %275 = vector.broadcast %272 : vector<8x1xf32> to vector<8x256xf32>
    %276 = arith.mulf %200, %275 : vector<8x256xf32>
    %277 = vector.broadcast %274 : vector<8x1xf32> to vector<8x256xf32>
    %278 = arith.addf %276, %277 : vector<8x256xf32>
    %279 = vector.broadcast %272 : vector<8x1xf32> to vector<8x256xf32>
    %280 = arith.mulf %252, %279 : vector<8x256xf32>
    %281 = vector.broadcast %274 : vector<8x1xf32> to vector<8x256xf32>
    %282 = arith.addf %280, %281 : vector<8x256xf32>
    %283 = vector.extract_strided_slice %278 {offsets = [0, 239], sizes = [8, 17], strides = [1, 1]} : vector<8x256xf32> to vector<8x17xf32>
    %284 = vector.extract_strided_slice %278 {offsets = [0, 0], sizes = [8, 239], strides = [1, 1]} : vector<8x256xf32> to vector<8x239xf32>
    %285 = tpu.concatenate %283, %284 in 1 : vector<8x17xf32>, vector<8x239xf32> -> vector<8x256xf32>
    %286 = vector.extract_strided_slice %0 {offsets = [0, 0], sizes = [1, 256], strides = [1, 1]} : vector<9x256xf32> to vector<1x256xf32>
    %287 = vector.broadcast %286 : vector<1x256xf32> to vector<8x256xf32>
    %288 = arith.mulf %285, %287 : vector<8x256xf32>
    %289 = vector.extract_strided_slice %278 {offsets = [0, 240], sizes = [8, 16], strides = [1, 1]} : vector<8x256xf32> to vector<8x16xf32>
    %290 = vector.extract_strided_slice %278 {offsets = [0, 0], sizes = [8, 240], strides = [1, 1]} : vector<8x256xf32> to vector<8x240xf32>
    %291 = tpu.concatenate %289, %290 in 1 : vector<8x16xf32>, vector<8x240xf32> -> vector<8x256xf32>
    %292 = vector.extract_strided_slice %0 {offsets = [1, 0], sizes = [1, 256], strides = [1, 1]} : vector<9x256xf32> to vector<1x256xf32>
    %293 = vector.broadcast %292 : vector<1x256xf32> to vector<8x256xf32>
    %294 = arith.mulf %291, %293 : vector<8x256xf32>
    %295 = vector.extract_strided_slice %278 {offsets = [0, 241], sizes = [8, 15], strides = [1, 1]} : vector<8x256xf32> to vector<8x15xf32>
    %296 = vector.extract_strided_slice %278 {offsets = [0, 0], sizes = [8, 241], strides = [1, 1]} : vector<8x256xf32> to vector<8x241xf32>
    %297 = tpu.concatenate %295, %296 in 1 : vector<8x15xf32>, vector<8x241xf32> -> vector<8x256xf32>
    %298 = vector.extract_strided_slice %0 {offsets = [2, 0], sizes = [1, 256], strides = [1, 1]} : vector<9x256xf32> to vector<1x256xf32>
    %299 = vector.broadcast %298 : vector<1x256xf32> to vector<8x256xf32>
    %300 = arith.mulf %297, %299 : vector<8x256xf32>
    %301 = vector.extract_strided_slice %278 {offsets = [0, 255], sizes = [8, 1], strides = [1, 1]} : vector<8x256xf32> to vector<8x1xf32>
    %302 = vector.extract_strided_slice %278 {offsets = [0, 0], sizes = [8, 255], strides = [1, 1]} : vector<8x256xf32> to vector<8x255xf32>
    %303 = tpu.concatenate %301, %302 in 1 : vector<8x1xf32>, vector<8x255xf32> -> vector<8x256xf32>
    %304 = vector.extract_strided_slice %0 {offsets = [3, 0], sizes = [1, 256], strides = [1, 1]} : vector<9x256xf32> to vector<1x256xf32>
    %305 = vector.broadcast %304 : vector<1x256xf32> to vector<8x256xf32>
    %306 = arith.mulf %303, %305 : vector<8x256xf32>
    %307 = vector.extract_strided_slice %278 {offsets = [0, 1], sizes = [8, 255], strides = [1, 1]} : vector<8x256xf32> to vector<8x255xf32>
    %308 = vector.extract_strided_slice %278 {offsets = [0, 0], sizes = [8, 1], strides = [1, 1]} : vector<8x256xf32> to vector<8x1xf32>
    %309 = tpu.concatenate %307, %308 in 1 : vector<8x255xf32>, vector<8x1xf32> -> vector<8x256xf32>
    %310 = vector.extract_strided_slice %0 {offsets = [5, 0], sizes = [1, 256], strides = [1, 1]} : vector<9x256xf32> to vector<1x256xf32>
    %311 = vector.broadcast %310 : vector<1x256xf32> to vector<8x256xf32>
    %312 = arith.mulf %309, %311 : vector<8x256xf32>
    %313 = vector.extract_strided_slice %278 {offsets = [0, 15], sizes = [8, 241], strides = [1, 1]} : vector<8x256xf32> to vector<8x241xf32>
    %314 = vector.extract_strided_slice %278 {offsets = [0, 0], sizes = [8, 15], strides = [1, 1]} : vector<8x256xf32> to vector<8x15xf32>
    %315 = tpu.concatenate %313, %314 in 1 : vector<8x241xf32>, vector<8x15xf32> -> vector<8x256xf32>
    %316 = vector.extract_strided_slice %0 {offsets = [6, 0], sizes = [1, 256], strides = [1, 1]} : vector<9x256xf32> to vector<1x256xf32>
    %317 = vector.broadcast %316 : vector<1x256xf32> to vector<8x256xf32>
    %318 = arith.mulf %315, %317 : vector<8x256xf32>
    %319 = vector.extract_strided_slice %278 {offsets = [0, 16], sizes = [8, 240], strides = [1, 1]} : vector<8x256xf32> to vector<8x240xf32>
    %320 = vector.extract_strided_slice %278 {offsets = [0, 0], sizes = [8, 16], strides = [1, 1]} : vector<8x256xf32> to vector<8x16xf32>
    %321 = tpu.concatenate %319, %320 in 1 : vector<8x240xf32>, vector<8x16xf32> -> vector<8x256xf32>
    %322 = vector.extract_strided_slice %0 {offsets = [7, 0], sizes = [1, 256], strides = [1, 1]} : vector<9x256xf32> to vector<1x256xf32>
    %323 = vector.broadcast %322 : vector<1x256xf32> to vector<8x256xf32>
    %324 = arith.mulf %321, %323 : vector<8x256xf32>
    %325 = vector.extract_strided_slice %278 {offsets = [0, 17], sizes = [8, 239], strides = [1, 1]} : vector<8x256xf32> to vector<8x239xf32>
    %326 = vector.extract_strided_slice %278 {offsets = [0, 0], sizes = [8, 17], strides = [1, 1]} : vector<8x256xf32> to vector<8x17xf32>
    %327 = tpu.concatenate %325, %326 in 1 : vector<8x239xf32>, vector<8x17xf32> -> vector<8x256xf32>
    %328 = vector.extract_strided_slice %0 {offsets = [8, 0], sizes = [1, 256], strides = [1, 1]} : vector<9x256xf32> to vector<1x256xf32>
    %329 = vector.broadcast %328 : vector<1x256xf32> to vector<8x256xf32>
    %330 = arith.mulf %327, %329 : vector<8x256xf32>
    %331 = tpu.concatenate %288, %294, %300, %306, %278, %312, %318, %324, %330 in 0 : vector<8x256xf32>, vector<8x256xf32>, vector<8x256xf32>, vector<8x256xf32>, vector<8x256xf32>, vector<8x256xf32>, vector<8x256xf32>, vector<8x256xf32>, vector<8x256xf32> -> vector<72x256xf32>
    %cst_41 = arith.constant dense<0.000000e+00> : vector<24x256xf32>
    %332 = tpu.matmul %5, %331, %cst_41 {dimension_numbers = #tpu.dot_dimension_numbers<[1], [0], [0], [1], [0, 0, 1, 1], [], []>} : vector<24x72xf32>, vector<72x256xf32>, vector<24x256xf32> -> vector<24x256xf32>
    %333 = vector.broadcast %6 : vector<24x1xf32> to vector<24x256xf32>
    %334 = arith.addf %332, %333 : vector<24x256xf32>
    %335 = vector.extract_strided_slice %334 {offsets = [0, 0], sizes = [8, 256], strides = [1, 1]} : vector<24x256xf32> to vector<8x256xf32>
    %336 = vector.extract_strided_slice %334 {offsets = [8, 0], sizes = [8, 256], strides = [1, 1]} : vector<24x256xf32> to vector<8x256xf32>
    %337 = vector.extract_strided_slice %334 {offsets = [16, 0], sizes = [8, 256], strides = [1, 1]} : vector<24x256xf32> to vector<8x256xf32>
    %338 = tpu.transpose %336, [1, 0] : vector<8x256xf32> -> vector<256x8xf32>
    %cst_42 = arith.constant dense<0.000000e+00> : vector<8x8xf32>
    %339 = tpu.matmul %335, %338, %cst_42 {dimension_numbers = #tpu.dot_dimension_numbers<[1], [0], [0], [1], [0, 0, 1, 1], [], []>} : vector<8x256xf32>, vector<256x8xf32>, vector<8x8xf32> -> vector<8x8xf32>
    %cst_43 = arith.constant 0.176776692 : f32
    %340 = vector.broadcast %cst_43 : f32 to vector<8x8xf32>
    %341 = arith.mulf %339, %340 : vector<8x8xf32>
    %cst_44 = arith.constant dense<0xFF800000> : vector<8xf32>
    %342 = vector.multi_reduction <maximumf>, %341, %cst_44 [1] : vector<8x8xf32> to vector<8xf32>
    %343 = vector.shape_cast %342 : vector<8xf32> to vector<8x1xf32>
    %344 = vector.broadcast %343 : vector<8x1xf32> to vector<8x8xf32>
    %345 = arith.subf %341, %344 : vector<8x8xf32>
    %346 = math.exp %345 : vector<8x8xf32>
    %cst_45 = arith.constant dense<0.000000e+00> : vector<8xf32>
    %347 = vector.multi_reduction <add>, %346, %cst_45 [1] : vector<8x8xf32> to vector<8xf32>
    %348 = vector.shape_cast %347 : vector<8xf32> to vector<8x1xf32>
    %349 = tpu.reciprocal %348 {approx = true} : vector<8x1xf32> -> vector<8x1xf32>
    %350 = vector.broadcast %349 : vector<8x1xf32> to vector<8x8xf32>
    %351 = arith.mulf %346, %350 : vector<8x8xf32>
    %cst_46 = arith.constant dense<0.000000e+00> : vector<8x256xf32>
    %352 = tpu.matmul %351, %337, %cst_46 {dimension_numbers = #tpu.dot_dimension_numbers<[1], [0], [0], [1], [0, 0, 1, 1], [], []>} : vector<8x8xf32>, vector<8x256xf32>, vector<8x256xf32> -> vector<8x256xf32>
    %cst_47 = arith.constant 0.000000e+00 : f32
    %353 = vector.broadcast %cst_47 : f32 to vector<8x256xf32>
    %354 = arith.maximumf %352, %353 : vector<8x256xf32>
    %c0_48 = arith.constant 0 : index
    %c0_49 = arith.constant 0 : index
    %c0_50 = arith.constant 0 : index
    %355 = vector.load %arg12[%c0_48, %c0_49, %c0_50] : memref<2x8x256xf32, #tpu.memory_space<vmem>>, vector<1x8x256xf32>
    %356 = vector.shape_cast %355 : vector<1x8x256xf32> to vector<8x256xf32>
    %357 = vector.shape_cast %354 : vector<8x256xf32> to vector<1x8x256xf32>
    tpu.vector_store %arg12[%c0_48, %c0_49, %c0_50], %357 {strides = array<i32>} : memref<2x8x256xf32, #tpu.memory_space<vmem>>, vector<1x8x256xf32>,
    %358 = vector.extract_strided_slice %282 {offsets = [0, 239], sizes = [8, 17], strides = [1, 1]} : vector<8x256xf32> to vector<8x17xf32>
    %359 = vector.extract_strided_slice %282 {offsets = [0, 0], sizes = [8, 239], strides = [1, 1]} : vector<8x256xf32> to vector<8x239xf32>
    %360 = tpu.concatenate %358, %359 in 1 : vector<8x17xf32>, vector<8x239xf32> -> vector<8x256xf32>
    %361 = vector.extract_strided_slice %0 {offsets = [0, 0], sizes = [1, 256], strides = [1, 1]} : vector<9x256xf32> to vector<1x256xf32>
    %362 = vector.broadcast %361 : vector<1x256xf32> to vector<8x256xf32>
    %363 = arith.mulf %360, %362 : vector<8x256xf32>
    %364 = vector.extract_strided_slice %282 {offsets = [0, 240], sizes = [8, 16], strides = [1, 1]} : vector<8x256xf32> to vector<8x16xf32>
    %365 = vector.extract_strided_slice %282 {offsets = [0, 0], sizes = [8, 240], strides = [1, 1]} : vector<8x256xf32> to vector<8x240xf32>
    %366 = tpu.concatenate %364, %365 in 1 : vector<8x16xf32>, vector<8x240xf32> -> vector<8x256xf32>
    %367 = vector.extract_strided_slice %0 {offsets = [1, 0], sizes = [1, 256], strides = [1, 1]} : vector<9x256xf32> to vector<1x256xf32>
    %368 = vector.broadcast %367 : vector<1x256xf32> to vector<8x256xf32>
    %369 = arith.mulf %366, %368 : vector<8x256xf32>
    %370 = vector.extract_strided_slice %282 {offsets = [0, 241], sizes = [8, 15], strides = [1, 1]} : vector<8x256xf32> to vector<8x15xf32>
    %371 = vector.extract_strided_slice %282 {offsets = [0, 0], sizes = [8, 241], strides = [1, 1]} : vector<8x256xf32> to vector<8x241xf32>
    %372 = tpu.concatenate %370, %371 in 1 : vector<8x15xf32>, vector<8x241xf32> -> vector<8x256xf32>
    %373 = vector.extract_strided_slice %0 {offsets = [2, 0], sizes = [1, 256], strides = [1, 1]} : vector<9x256xf32> to vector<1x256xf32>
    %374 = vector.broadcast %373 : vector<1x256xf32> to vector<8x256xf32>
    %375 = arith.mulf %372, %374 : vector<8x256xf32>
    %376 = vector.extract_strided_slice %282 {offsets = [0, 255], sizes = [8, 1], strides = [1, 1]} : vector<8x256xf32> to vector<8x1xf32>
    %377 = vector.extract_strided_slice %282 {offsets = [0, 0], sizes = [8, 255], strides = [1, 1]} : vector<8x256xf32> to vector<8x255xf32>
    %378 = tpu.concatenate %376, %377 in 1 : vector<8x1xf32>, vector<8x255xf32> -> vector<8x256xf32>
    %379 = vector.extract_strided_slice %0 {offsets = [3, 0], sizes = [1, 256], strides = [1, 1]} : vector<9x256xf32> to vector<1x256xf32>
    %380 = vector.broadcast %379 : vector<1x256xf32> to vector<8x256xf32>
    %381 = arith.mulf %378, %380 : vector<8x256xf32>
    %382 = vector.extract_strided_slice %282 {offsets = [0, 1], sizes = [8, 255], strides = [1, 1]} : vector<8x256xf32> to vector<8x255xf32>
    %383 = vector.extract_strided_slice %282 {offsets = [0, 0], sizes = [8, 1], strides = [1, 1]} : vector<8x256xf32> to vector<8x1xf32>
    %384 = tpu.concatenate %382, %383 in 1 : vector<8x255xf32>, vector<8x1xf32> -> vector<8x256xf32>
    %385 = vector.extract_strided_slice %0 {offsets = [5, 0], sizes = [1, 256], strides = [1, 1]} : vector<9x256xf32> to vector<1x256xf32>
    %386 = vector.broadcast %385 : vector<1x256xf32> to vector<8x256xf32>
    %387 = arith.mulf %384, %386 : vector<8x256xf32>
    %388 = vector.extract_strided_slice %282 {offsets = [0, 15], sizes = [8, 241], strides = [1, 1]} : vector<8x256xf32> to vector<8x241xf32>
    %389 = vector.extract_strided_slice %282 {offsets = [0, 0], sizes = [8, 15], strides = [1, 1]} : vector<8x256xf32> to vector<8x15xf32>
    %390 = tpu.concatenate %388, %389 in 1 : vector<8x241xf32>, vector<8x15xf32> -> vector<8x256xf32>
    %391 = vector.extract_strided_slice %0 {offsets = [6, 0], sizes = [1, 256], strides = [1, 1]} : vector<9x256xf32> to vector<1x256xf32>
    %392 = vector.broadcast %391 : vector<1x256xf32> to vector<8x256xf32>
    %393 = arith.mulf %390, %392 : vector<8x256xf32>
    %394 = vector.extract_strided_slice %282 {offsets = [0, 16], sizes = [8, 240], strides = [1, 1]} : vector<8x256xf32> to vector<8x240xf32>
    %395 = vector.extract_strided_slice %282 {offsets = [0, 0], sizes = [8, 16], strides = [1, 1]} : vector<8x256xf32> to vector<8x16xf32>
    %396 = tpu.concatenate %394, %395 in 1 : vector<8x240xf32>, vector<8x16xf32> -> vector<8x256xf32>
    %397 = vector.extract_strided_slice %0 {offsets = [7, 0], sizes = [1, 256], strides = [1, 1]} : vector<9x256xf32> to vector<1x256xf32>
    %398 = vector.broadcast %397 : vector<1x256xf32> to vector<8x256xf32>
    %399 = arith.mulf %396, %398 : vector<8x256xf32>
    %400 = vector.extract_strided_slice %282 {offsets = [0, 17], sizes = [8, 239], strides = [1, 1]} : vector<8x256xf32> to vector<8x239xf32>
    %401 = vector.extract_strided_slice %282 {offsets = [0, 0], sizes = [8, 17], strides = [1, 1]} : vector<8x256xf32> to vector<8x17xf32>
    %402 = tpu.concatenate %400, %401 in 1 : vector<8x239xf32>, vector<8x17xf32> -> vector<8x256xf32>
    %403 = vector.extract_strided_slice %0 {offsets = [8, 0], sizes = [1, 256], strides = [1, 1]} : vector<9x256xf32> to vector<1x256xf32>
    %404 = vector.broadcast %403 : vector<1x256xf32> to vector<8x256xf32>
    %405 = arith.mulf %402, %404 : vector<8x256xf32>
    %406 = tpu.concatenate %363, %369, %375, %381, %282, %387, %393, %399, %405 in 0 : vector<8x256xf32>, vector<8x256xf32>, vector<8x256xf32>, vector<8x256xf32>, vector<8x256xf32>, vector<8x256xf32>, vector<8x256xf32>, vector<8x256xf32>, vector<8x256xf32> -> vector<72x256xf32>
    %cst_51 = arith.constant dense<0.000000e+00> : vector<24x256xf32>
    %407 = tpu.matmul %5, %406, %cst_51 {dimension_numbers = #tpu.dot_dimension_numbers<[1], [0], [0], [1], [0, 0, 1, 1], [], []>} : vector<24x72xf32>, vector<72x256xf32>, vector<24x256xf32> -> vector<24x256xf32>
    %408 = vector.broadcast %6 : vector<24x1xf32> to vector<24x256xf32>
    %409 = arith.addf %407, %408 : vector<24x256xf32>
    %410 = vector.extract_strided_slice %409 {offsets = [0, 0], sizes = [8, 256], strides = [1, 1]} : vector<24x256xf32> to vector<8x256xf32>
    %411 = vector.extract_strided_slice %409 {offsets = [8, 0], sizes = [8, 256], strides = [1, 1]} : vector<24x256xf32> to vector<8x256xf32>
    %412 = vector.extract_strided_slice %409 {offsets = [16, 0], sizes = [8, 256], strides = [1, 1]} : vector<24x256xf32> to vector<8x256xf32>
    %413 = tpu.transpose %411, [1, 0] : vector<8x256xf32> -> vector<256x8xf32>
    %cst_52 = arith.constant dense<0.000000e+00> : vector<8x8xf32>
    %414 = tpu.matmul %410, %413, %cst_52 {dimension_numbers = #tpu.dot_dimension_numbers<[1], [0], [0], [1], [0, 0, 1, 1], [], []>} : vector<8x256xf32>, vector<256x8xf32>, vector<8x8xf32> -> vector<8x8xf32>
    %cst_53 = arith.constant 0.176776692 : f32
    %415 = vector.broadcast %cst_53 : f32 to vector<8x8xf32>
    %416 = arith.mulf %414, %415 : vector<8x8xf32>
    %cst_54 = arith.constant dense<0xFF800000> : vector<8xf32>
    %417 = vector.multi_reduction <maximumf>, %416, %cst_54 [1] : vector<8x8xf32> to vector<8xf32>
    %418 = vector.shape_cast %417 : vector<8xf32> to vector<8x1xf32>
    %419 = vector.broadcast %418 : vector<8x1xf32> to vector<8x8xf32>
    %420 = arith.subf %416, %419 : vector<8x8xf32>
    %421 = math.exp %420 : vector<8x8xf32>
    %cst_55 = arith.constant dense<0.000000e+00> : vector<8xf32>
    %422 = vector.multi_reduction <add>, %421, %cst_55 [1] : vector<8x8xf32> to vector<8xf32>
    %423 = vector.shape_cast %422 : vector<8xf32> to vector<8x1xf32>
    %424 = tpu.reciprocal %423 {approx = true} : vector<8x1xf32> -> vector<8x1xf32>
    %425 = vector.broadcast %424 : vector<8x1xf32> to vector<8x8xf32>
    %426 = arith.mulf %421, %425 : vector<8x8xf32>
    %cst_56 = arith.constant dense<0.000000e+00> : vector<8x256xf32>
    %427 = tpu.matmul %426, %412, %cst_56 {dimension_numbers = #tpu.dot_dimension_numbers<[1], [0], [0], [1], [0, 0, 1, 1], [], []>} : vector<8x8xf32>, vector<8x256xf32>, vector<8x256xf32> -> vector<8x256xf32>
    %cst_57 = arith.constant 0.000000e+00 : f32
    %428 = vector.broadcast %cst_57 : f32 to vector<8x256xf32>
    %429 = arith.maximumf %427, %428 : vector<8x256xf32>
    %c1_58 = arith.constant 1 : index
    %c0_59 = arith.constant 0 : index
    %c0_60 = arith.constant 0 : index
    %430 = vector.load %arg12[%c1_58, %c0_59, %c0_60] : memref<2x8x256xf32, #tpu.memory_space<vmem>>, vector<1x8x256xf32>
    %431 = vector.shape_cast %430 : vector<1x8x256xf32> to vector<8x256xf32>
    %432 = vector.shape_cast %429 : vector<8x256xf32> to vector<1x8x256xf32>
    tpu.vector_store %arg12[%c1_58, %c0_59, %c0_60], %432 {strides = array<i32>} : memref<2x8x256xf32, #tpu.memory_space<vmem>>, vector<1x8x256xf32>,
    return
  }
}

</mosaic_0001>

<bundles_post_ra>
// kernel: tpu_custom_call.1
= control target key start
LH: loop header
LB: loop body
LE: loop exit
PB: predicated region body
PF: predicated region fallthrough
CT: control target
= control target key end

     0   :  { %17 = vsyncpa [#allocation3], 0  ;;  %s2349_s0 = inlined_call_operand.vmem [shape: f32[2,4,256], index: 0, kind: input, shape index: {}]   ;;  %s2350_s1 = inlined_call_operand.vmem [shape: f32[9,256], index: 1, kind: input, shape index: {}]   ;;  %s2351_s2 = inlined_call_operand.vmem [shape: f32[8,36], index: 2, kind: input, shape index: {}]   ;;  %s2352_s3 = inlined_call_operand.vmem [shape: f32[8,1], index: 3, kind: input, shape index: {}]   ;;  %s2353_s4 = inlined_call_operand.vmem [shape: f32[8,1], index: 4, kind: input, shape index: {}]   ;;  %s2354_s5 = inlined_call_operand.vmem [shape: f32[8,1], index: 5, kind: input, shape index: {}]   ;;  %s2355_s6 = inlined_call_operand.vmem [shape: f32[8,72], index: 6, kind: input, shape index: {}]   ;;  %s2356_s7 = inlined_call_operand.vmem [shape: f32[8,1], index: 7, kind: input, shape index: {}]   ;;  %s2357_s8 = inlined_call_operand.vmem [shape: f32[8,1], index: 8, kind: input, shape index: {}]   ;;  %s2358_s9 = inlined_call_operand.vmem [shape: f32[8,1], index: 9, kind: input, shape index: {}]   ;;  %s2359_s10 = inlined_call_operand.hbm [shape: f32[24,72], index: 10, kind: input, shape index: {}]   ;;  %s2360_s11 = inlined_call_operand.vmem [shape: f32[24,1], index: 11, kind: input, shape index: {}]   ;;  %s2361_s12 = inlined_call_operand.hbm [shape: f32[2,8,256], index: 12, kind: output, shape index: {}]  }
   0x1   :  { %18 = vsyncpa [#allocation4], 0  ;;  %s43_s23 = sshll.u32 %s2359_s10, 4  ;;  %s1582_s24 = smov [#allocation2]   ;;  %s44_s23 = int_to_ptr.hbm [resolvable:$true] %s43_s23 }
   0x2   :  { %s45_s25 = sshll.u32 %s1582_s24, 4  ;;  %s1583_s26 = smov 128   ;;  %s46_s25 = int_to_ptr.vmem [resolvable:$true] %s45_s25 }
   0x3   :  { %s1584_s27 = smov 8  }
   0x4   :  { %51 = dma.hbm_to_vmem [thread:$0]  %s44_s23, 384, %s46_s25, [#allocation3], %s1583_s26, %s1583_s26, %s1584_s27  }
   0x5   :  { %1578 = dma.done.wait [#allocation3], 384  }
   0x6   :  { %1579 = vsyncadd [#allocation3], 4294966912  ;;  %v1667_v0 = vld [vmem:[%s2349_s0] sm:$0xff]  ;;  %s1585_s10 = smov 16   ;;  %s1586_s30 = smov 1   ;;  %v1719_v25 = vld [vmem:[%s2349_s0 + $0x8] sm:$0xff] }
   0x7   :  { %74 = vst [vmem:[#allocation1] ss:$2 sm:$0xff] %v1667_v0  ;;  %s1587_s13 = smov 127   ;;  %s1588_s14 = smov 113   ;;  %vm107_vm0 = vcmask 130048   ;;  %vm149_vm1 = vcmask 7168  }
   0x8   :  { %s1589_s15 = smov 112   ;;  %s1590_s16 = smov 111   ;;  %v1771_v62 = vld [vmem:[%s2350_s1] sm:$0xff]  ;;  %v1776_v63 = vld [vmem:[%s2350_s1 + $0x8] sm:$0xff]  ;;  %vm165_vm2 = vcmask 1039360   ;;  %vm207_vm3 = vcmask 916480  }
   0x9   :  { %s1591_s19 = smov 17   ;;  %s1592_s0 = smov 15   ;;  %vm186_vm4 = vcmask 924672   ;;  %vm228_vm5 = vcmask 908288   ;;  %vm271_vm6 = vcmask 1043456   ;;  %vm86_vm7 = vcmask 138240  }
   0xa   :  { %vm128_vm8 = vcmask 121856   ;;  %vm285_vm9 = vcmask 293888   ;;  %vm716_vm13 = vcmask 588800  }
   0xe   :  { %v1670_v1 = vld.sshfl [vmem:[#allocation1 + $0x8] sm:$0xff pattern:$0x75316420] }
   0xf   :  { %79 = vst [vmem:[#allocation1] ss:$2 sm:$0xff] %v1667_v0 }
  0x16   :  { %v1673_v2 = vld.sshfl [vmem:[#allocation1] sm:$0xff pattern:$0x75316420]  ;;  %v1675_v3 = vld.sshfl [vmem:[#allocation1 + $0x8] sm:$0xff pattern:$0x75316420] }
  0x17   :  { %95 = vst [vmem:[#allocation1] ss:$2 sm:$0xff] %v1667_v0 }
  0x1e   :  { %v96_v4 = vld.sshfl [vmem:[#allocation1 + $0x8] sm:$0xff pattern:$0x75316420] }
  0x1f   :  { %97 = vrot.lane.b32.xlu0 %v96_v4, %s1585_s10  ;;  %100 = vst [vmem:[#allocation1] ss:$2 sm:$0xff] %v1667_v0 }
  0x26   :  { %v101_v5 = vld.sshfl [vmem:[#allocation1] sm:$0xff pattern:$0x75316420]  ;;  %v102_v6 = vld.sshfl [vmem:[#allocation1 + $0x8] sm:$0xff pattern:$0x75316420] }
  0x27   :  { %103 = vrot.lane.b32.xlu1 %v101_v5, %s1585_s10  ;;  %116 = vst [vmem:[#allocation1] ss:$2 sm:$0xff] %v1667_v0  ;;  %105 = vrot.lane.b32.xlu2 %v102_v6, %s1585_s10  ;;  %v1781_v6 = vperm.slane %v1771_v62, 7 }
  0x2e   :  { %v1683_v7 = vld.sshfl [vmem:[#allocation1 + $0x8] sm:$0xff pattern:$0x75316420] }
  0x2f   :  { %121 = vst [vmem:[#allocation1] ss:$2 sm:$0xff] %v1667_v0 }
  0x36   :  { %v1686_v8 = vld.sshfl [vmem:[#allocation1] sm:$0xff pattern:$0x75316420]  ;;  %v1688_v9 = vld.sshfl [vmem:[#allocation1 + $0x8] sm:$0xff pattern:$0x75316420] }
  0x37   :  { %137 = vst [vmem:[#allocation1] ss:$2 sm:$0xff] %v1667_v0 }
  0x3e   :  { %v138_v10 = vld.sshfl [vmem:[#allocation1 + $0x8] sm:$0xff pattern:$0x75316420] }
  0x3f   :  { %139 = vrot.lane.b32.xlu0 %v138_v10, %s1586_s30  ;;  %142 = vst [vmem:[#allocation1] ss:$2 sm:$0xff] %v1667_v0 }
  0x46   :  { %v143_v11 = vld.sshfl [vmem:[#allocation1] sm:$0xff pattern:$0x75316420]  ;;  %v144_v12 = vld.sshfl [vmem:[#allocation1 + $0x8] sm:$0xff pattern:$0x75316420] }
  0x47   :  { %145 = vrot.lane.b32.xlu1 %v143_v11, %s1586_s30  ;;  %158 = vst [vmem:[#allocation1] ss:$2 sm:$0xff] %v1667_v0  ;;  %147 = vrot.lane.b32.xlu2 %v144_v12, %s1586_s30  ;;  %v1784_v11 = vperm.slane %v1776_v63, 7 }
  0x4e   :  { %v160_v13 = vld.sshfl [vmem:[#allocation1 + $0x8] sm:$0xff pattern:$0x75316420]  ;;  %v159_v14 = vld.sshfl [vmem:[#allocation1] sm:$0xff pattern:$0x75316420] }
  0x4f   :  { %163 = vrot.lane.b32.xlu1 %v160_v13, %s1587_s13  ;;  %161 = vrot.lane.b32.xlu0 %v159_v14, %s1587_s13  ;;  %169 = vst [vmem:[#allocation1] ss:$2 sm:$0xff] %v1667_v0  ;;  %v1787_v13 = vperm.slane %v1771_v62, 5 }
  0x56   :  { %v170_v15 = vld.sshfl [vmem:[#allocation1] sm:$0xff pattern:$0x75316420] }
  0x57   :  { %179 = vst [vmem:[#allocation1] ss:$2 sm:$0xff] %v1667_v0  ;;  %171 = vrot.lane.b32.xlu2 %v170_v15, %s1587_s13 }
  0x5e   :  { %v181_v16 = vld.sshfl [vmem:[#allocation1 + $0x8] sm:$0xff pattern:$0x75316420]  ;;  %v180_v17 = vld.sshfl [vmem:[#allocation1] sm:$0xff pattern:$0x75316420] }
  0x5f   :  { %184 = vrot.lane.b32.xlu1 %v181_v16, %s1588_s14  ;;  %182 = vrot.lane.b32.xlu0 %v180_v17, %s1588_s14  ;;  %190 = vst [vmem:[#allocation1] ss:$2 sm:$0xff] %v1667_v0 }
  0x66   :  { %v191_v18 = vld.sshfl [vmem:[#allocation1] sm:$0xff pattern:$0x75316420] }
  0x67   :  { %200 = vst [vmem:[#allocation1] ss:$2 sm:$0xff] %v1667_v0  ;;  %192 = vrot.lane.b32.xlu2 %v191_v18, %s1588_s14  ;;  %v1794_v18 = vperm.slane %v1776_v63, 5 }
  0x6e   :  { %v202_v19 = vld.sshfl [vmem:[#allocation1 + $0x8] sm:$0xff pattern:$0x75316420]  ;;  %v201_v20 = vld.sshfl [vmem:[#allocation1] sm:$0xff pattern:$0x75316420] }
  0x6f   :  { %205 = vrot.lane.b32.xlu1 %v202_v19, %s1589_s15  ;;  %203 = vrot.lane.b32.xlu0 %v201_v20, %s1589_s15  ;;  %211 = vst [vmem:[#allocation1] ss:$2 sm:$0xff] %v1667_v0  ;;  %v1797_v19 = vperm.slane %v1771_v62, 6  ;;  %v1800_v20 = vperm.slane %v1776_v63, 6 }
  0x76   :  { %v212_v21 = vld.sshfl [vmem:[#allocation1] sm:$0xff pattern:$0x75316420] }
  0x77   :  { %221 = vst [vmem:[#allocation1] ss:$2 sm:$0xff] %v1667_v0  ;;  %213 = vrot.lane.b32.xlu2 %v212_v21, %s1589_s15 }
  0x7e   :  { %v223_v22 = vld.sshfl [vmem:[#allocation1 + $0x8] sm:$0xff pattern:$0x75316420]  ;;  %v222_v23 = vld.sshfl [vmem:[#allocation1] sm:$0xff pattern:$0x75316420] }
  0x7f   :  { %226 = vrot.lane.b32.xlu1 %v223_v22, %s1590_s16  ;;  %224 = vrot.lane.b32.xlu0 %v222_v23, %s1590_s16  ;;  %232 = vst [vmem:[#allocation1] ss:$2 sm:$0xff] %v1667_v0 }
  0x81   :  { %v106_v43 = vpop.permute.xlu2 %105 }
  0x86   :  { %v233_v24 = vld.sshfl [vmem:[#allocation1] sm:$0xff pattern:$0x75316420] }
  0x87   :  { %254 = vst [vmem:[#allocation1] ss:$2 sm:$0xff] %v1667_v0  ;;  %234 = vrot.lane.b32.xlu2 %v233_v24, %s1590_s16 }
  0x8e   :  { %v1721_v26 = vld.sshfl [vmem:[#allocation1] sm:$0xff pattern:$0x75316420]  ;;  %v1723_v27 = vld.sshfl [vmem:[#allocation1 + $0x8] sm:$0xff pattern:$0x75316420] }
  0x8f   :  { %338 = vst [vmem:[#allocation1] ss:$2 sm:$0xff] %v1719_v25 }
  0x91   :  { %v98_v42 = vpop.permute.xlu0 %97 }
  0x96   :  { %v339_v28 = vld.sshfl [vmem:[#allocation1 + $0x8] sm:$0xff pattern:$0x75316420] }
  0x97   :  { %340 = vrot.lane.b32.xlu0 %v339_v28, %s1591_s19  ;;  %343 = vst [vmem:[#allocation1] ss:$2 sm:$0xff] %v1719_v25 }
  0x99   :  { %v104_v44 = vpop.permute.xlu1 %103 }
  0x9a   :  { %v1750_v45 = vsel %vm107_vm0, %v104_v44, %v106_v43  ;;  %v1753_v46 = vsel %vm107_vm0, %v98_v42, %v104_v44 }
  0x9e   :  { %v344_v29 = vld.sshfl [vmem:[#allocation1] sm:$0xff pattern:$0x75316420]  ;;  %v345_v30 = vld.sshfl [vmem:[#allocation1 + $0x8] sm:$0xff pattern:$0x75316420] }
  0x9f   :  { %346 = vrot.lane.b32.xlu1 %v344_v29, %s1591_s19  ;;  %356 = vst [vmem:[#allocation1] ss:$2 sm:$0xff] %v1719_v25  ;;  %348 = vrot.lane.b32.xlu2 %v345_v30, %s1591_s19  ;;  %v1810_v29 = vld [vmem:[%s2350_s1 + $0x10] ss:$0 sm:$0xff] }
  0xa1   :  { %v148_v49 = vpop.permute.xlu2 %147 }
  0xa6   :  { %v357_v31 = vld.sshfl [vmem:[#allocation1 + $0x8] sm:$0xff pattern:$0x75316420] }
  0xa7   :  { %358 = vrot.lane.b32.xlu0 %v357_v31, %s1585_s10  ;;  %361 = vst [vmem:[#allocation1] ss:$2 sm:$0xff] %v1719_v25 }
  0xae   :  { %v362_v32 = vld.sshfl [vmem:[#allocation1] sm:$0xff pattern:$0x75316420]  ;;  %v363_v33 = vld.sshfl [vmem:[#allocation1 + $0x8] sm:$0xff pattern:$0x75316420] }
  0xaf   :  { %364 = vrot.lane.b32.xlu1 %v362_v32, %s1585_s10  ;;  %374 = vst [vmem:[#allocation1] ss:$2 sm:$0xff] %v1719_v25  ;;  %366 = vrot.lane.b32.xlu2 %v363_v33, %s1585_s10  ;;  %v1816_v32 = vld [vmem:[%s2350_s1 + $0x18] ss:$0 sm:$0xff] }
  0xb1   :  { %v140_v48 = vpop.permute.xlu0 %139  ;;  %v172_v56 = vpop.permute.xlu2 %171 }
  0xb6   :  { %v375_v34 = vld.sshfl [vmem:[#allocation1 + $0x8] sm:$0xff pattern:$0x75316420] }
  0xb7   :  { %376 = vrot.lane.b32.xlu0 %v375_v34, %s1592_s0  ;;  %379 = vst [vmem:[#allocation1] ss:$2 sm:$0xff] %v1719_v25 }
  0xb9   :  { %v146_v50 = vpop.permute.xlu1 %145 }
  0xba   :  { %v1758_v51 = vsel %vm149_vm1, %v146_v50, %v148_v49  ;;  %v1761_v52 = vsel %vm149_vm1, %v140_v48, %v146_v50 }
  0xbe   :  { %v380_v35 = vld.sshfl [vmem:[#allocation1] sm:$0xff pattern:$0x75316420]  ;;  %v381_v36 = vld.sshfl [vmem:[#allocation1 + $0x8] sm:$0xff pattern:$0x75316420] }
  0xbf   :  { %382 = vrot.lane.b32.xlu1 %v380_v35, %s1592_s0  ;;  %392 = vst [vmem:[#allocation1] ss:$2 sm:$0xff] %v1719_v25  ;;  %384 = vrot.lane.b32.xlu2 %v381_v36, %s1592_s0 }
  0xc1   :  { %v162_v55 = vpop.permute.xlu0 %161  ;;  %v164_v57 = vpop.permute.xlu1 %163 }
  0xc2   :  { %v193_v60 = vpop.permute.xlu2 %192  ;;  %v166_v16 = vsel %vm165_vm2, %v162_v55, %v164_v57  ;;  %v174_v17 = vsel %vm165_vm2, %v164_v57, %v172_v56 }
  0xc3   :  { %v177_v28 = vmul.f32 %v1787_v13, %v166_v16  ;;  %v178_v31 = vmul.f32 %v1794_v18, %v174_v17 }
  0xc5   :  { %v262_v43 = vrot.slane %v178_v31, 4 }
  0xc6   :  { %v393_v37 = vld.sshfl [vmem:[#allocation1 + $0x8] sm:$0xff pattern:$0x75316420] }
  0xc7   :  { %394 = vrot.lane.b32.xlu0 %v393_v37, %s1586_s30  ;;  %397 = vst [vmem:[#allocation1] ss:$2 sm:$0xff] %v1719_v25  ;;  %v277_v55 = vsel %vm271_vm6, %v1723_v27, %v262_v43 }
  0xce   :  { %v398_v38 = vld.sshfl [vmem:[#allocation1] sm:$0xff pattern:$0x75316420]  ;;  %v399_v39 = vld.sshfl [vmem:[#allocation1 + $0x8] sm:$0xff pattern:$0x75316420] }
  0xcf   :  { %400 = vrot.lane.b32.xlu1 %v398_v38, %s1586_s30  ;;  %410 = vst [vmem:[#allocation1] ss:$2 sm:$0xff] %v1719_v25  ;;  %402 = vrot.lane.b32.xlu2 %v399_v39, %s1586_s30 }
  0xd1   :  { %v183_v59 = vpop.permute.xlu0 %182  ;;  %v185_v61 = vpop.permute.xlu1 %184 }
  0xd2   :  { %v214_v10 = vpop.permute.xlu2 %213  ;;  %v187_v23 = vsel %vm186_vm4, %v183_v59, %v185_v61  ;;  %v195_v24 = vsel %vm186_vm4, %v185_v61, %v193_v60 }
  0xd3   :  { %v198_v33 = vmul.f32 %v1797_v19, %v187_v23  ;;  %v199_v34 = vmul.f32 %v1800_v20, %v195_v24  ;;  %v1868_v23 = vperm.slane %v1776_v63, 3 }
  0xd6   :  { %v411_v40 = vld.sshfl [vmem:[#allocation1] sm:$0xff pattern:$0x75316420]  ;;  %v412_v41 = vld.sshfl [vmem:[#allocation1 + $0x8] sm:$0xff pattern:$0x75316420] }
  0xd7   :  { %413 = vrot.lane.b32.xlu0 %v411_v40, %s1587_s13  ;;  %415 = vrot.lane.b32.xlu1 %v412_v41, %s1587_s13  ;;  %420 = vst [vmem:[#allocation1] ss:$2 sm:$0xff] %v1719_v25  ;;  %v261_v40 = vrot.slane %v177_v28, 4  ;;  %v1593_v28 = vmov 0  }
  0xd8   :  { %1512 = vset.pattern.permute.xlu0 %v1593_v28  ;;  %1513 = vset.pattern.permute.xlu1 %v1593_v28 }
  0xd9   :  { %v276_v50 = vsel %vm271_vm6, %v1721_v26, %v261_v40 }
  0xde   :  { %v421_v47 = vld.sshfl [vmem:[#allocation1] sm:$0xff pattern:$0x75316420] }
  0xdf   :  { %428 = vst [vmem:[#allocation1] ss:$2 sm:$0xff] %v1719_v25  ;;  %422 = vrot.lane.b32.xlu2 %v421_v47, %s1587_s13 }
  0xe1   :  { %v204_v5 = vpop.permute.xlu0 %203  ;;  %v206_v12 = vpop.permute.xlu1 %205 }
  0xe2   :  { %v208_v14 = vsel %vm207_vm3, %v204_v5, %v206_v12  ;;  %v216_v15 = vsel %vm207_vm3, %v206_v12, %v214_v10  ;;  %v235_v38 = vpop.permute.xlu2 %234 }
  0xe3   :  { %v219_v21 = vmul.f32 %v1781_v6, %v208_v14  ;;  %v220_v22 = vmul.f32 %v1784_v11, %v216_v15 }
  0xe5   :  { %v267_v35 = vrot.slane %v219_v21, 4  ;;  %v268_v36 = vrot.slane %v220_v22, 4  ;;  %v63_v22 = vld [vmem:[%s2352_s3] sm:$0xff]  ;;  %s1595_s3 = smov 256  }
  0xe6   :  { %v429_v53 = vld.sshfl [vmem:[#allocation1] sm:$0xff pattern:$0x75316420]  ;;  %v430_v54 = vld.sshfl [vmem:[#allocation1 + $0x8] sm:$0xff pattern:$0x75316420] }
  0xe7   :  { %431 = vrot.lane.b32.xlu0 %v429_v53, %s1588_s14  ;;  %433 = vrot.lane.b32.xlu1 %v430_v54, %s1588_s14  ;;  %438 = vst [vmem:[#allocation1] ss:$2 sm:$0xff] %v1719_v25  ;;  %v278_v48 = vsel %vm271_vm6, %v198_v33, %v267_v35  ;;  %v279_v49 = vsel %vm271_vm6, %v199_v34, %v268_v36  ;;  %v1874_v35 = vperm.slane %v1776_v63, 1 }
  0xee   :  { %v439_v58 = vld.sshfl [vmem:[#allocation1] sm:$0xff pattern:$0x75316420] }
  0xef   :  { %446 = vst [vmem:[#allocation1] ss:$2 sm:$0xff] %v1719_v25  ;;  %440 = vrot.lane.b32.xlu2 %v439_v58, %s1588_s14 }
  0xf1   :  { %v225_v37 = vpop.permute.xlu0 %224  ;;  %v227_v39 = vpop.permute.xlu1 %226 }
  0xf2   :  { %v229_v41 = vsel %vm228_vm5, %v225_v37, %v227_v39  ;;  %v237_v42 = vsel %vm228_vm5, %v227_v39, %v235_v38  ;;  %v1879_v38 = vperm.slane %v1776_v63, 2 }
  0xf3   :  { %v240_v44 = vmul.f32 %v1810_v29, %v229_v41  ;;  %v241_v47 = vmul.f32 %v1816_v32, %v237_v42  ;;  %v1885_v42 = vperm.slane %v1776_v63, 0 }
  0xf5   :  { %1469 = vmatpush.msk.msra.mxu0 %vm271_vm6, %v240_v44  ;;  %1471 = vmatpush.msk.msra.mxu1 %vm271_vm6, %v241_v47 }
  0xf6   :  { %v447_v0 = vld.sshfl [vmem:[#allocation1] sm:$0xff pattern:$0x75316420]  ;;  %v448_v4 = vld.sshfl [vmem:[#allocation1 + $0x8] sm:$0xff pattern:$0x75316420] }
  0xf7   :  { %449 = vrot.lane.b32.xlu0 %v447_v0, %s1589_s15  ;;  %456 = vst [vmem:[#allocation1] ss:$2 sm:$0xff] %v1719_v25  ;;  %307 = vmatpush.msra.mxu0 %v278_v48 }
  0xf8   :  { %327 = vmatpush.msra.mxu1 %v279_v49 }
  0xf9   :  { %308 = vmatpush.msra.mxu0 %v276_v50 }
  0xfa   :  { %328 = vmatpush.msra.mxu1 %v277_v55 }
  0xfe   :  { %v457_v30 = vld.sshfl [vmem:[#allocation1] sm:$0xff pattern:$0x75316420] }
  0xff   :  { %451 = vrot.lane.b32.xlu0 %v448_v4, %s1589_s15  ;;  %458 = vrot.lane.b32.xlu1 %v457_v30, %s1589_s15  ;;  %464 = vst [vmem:[#allocation1] ss:$2 sm:$0xff] %v1719_v25 }
 0x106   :  { %v465_v53 = vld.sshfl [vmem:[#allocation1] sm:$0xff pattern:$0x75316420]  ;;  %v466_v54 = vld.sshfl [vmem:[#allocation1 + $0x8] sm:$0xff pattern:$0x75316420] }
 0x107   :  { %467 = vrot.lane.b32.xlu1 %v465_v53, %s1590_s16  ;;  %118 = vrot.lane.b32.xlu0 %v1683_v7, %s1592_s0  ;;  %474 = vst [vmem:[#allocation1] ss:$2 sm:$0xff] %v1719_v25  ;;  %v349_v7 = vpop.permute.xlu2 %348 }
 0x108   :  { %469 = vrot.lane.b32.xlu2 %v466_v54, %s1590_s16 }
 0x109   :  { %v1852_v26 = vpop.permute.xlu0 %340 }
 0x10e   :  { %v475_v56 = vld.sshfl [vmem:[#allocation1] sm:$0xff pattern:$0x75316420] }
 0x10f   :  { %124 = vrot.lane.b32.xlu1 %v1686_v8, %s1592_s0  ;;  %76 = vrot.lane.b32.xlu0 %v1670_v1, %s1591_s19  ;;  %494 = vst [vmem:[#allocation1] ss:$2 sm:$0xff] %v1719_v25  ;;  %v367_v8 = vpop.permute.xlu2 %366 }
 0x110   :  { %476 = vrot.lane.b32.xlu2 %v475_v56, %s1590_s16 }
 0x111   :  { %v1854_v27 = vpop.permute.xlu1 %346 }
 0x112   :  { %v350_v43 = vsel %vm86_vm7, %v1854_v27, %v349_v7 }
 0x116   :  { %v496_v55 = vld.sshfl [vmem:[#allocation1 + $0x8] sm:$0xff pattern:$0x75316420] }
 0x117   :  { %82 = vrot.lane.b32.xlu1 %v1673_v2, %s1591_s19  ;;  %282 = vperm.xlu0 %1512, %v63_v22   ;;  %v1915_v22 = vperm.slane %v1771_v62, 0 }
 0x118   :  { %126 = vrot.lane.b32.xlu2 %v1688_v9, %s1592_s0 }
 0x119   :  { %v359_v1 = vpop.permute.xlu0 %358  ;;  %v385_v57 = vpop.permute.xlu2 %384 }
 0x120   :  { %84 = vrot.lane.b32.xlu2 %v1675_v3, %s1591_s19 }
 0x121   :  { %v365_v25 = vpop.permute.xlu1 %364 }
 0x122   :  { %v368_v30 = vsel %vm107_vm0, %v365_v25, %v367_v8 }
 0x123   :  { %v373_v44 = vmul.f32 %v368_v30, %v1874_v35 }
 0x129   :  { %v1856_v58 = vpop.permute.xlu0 %376  ;;  %v403_v59 = vpop.permute.xlu2 %402 }
 0x131   :  { %v1858_v60 = vpop.permute.xlu1 %382 }
 0x132   :  { %v386_v47 = vsel %vm128_vm8, %v1858_v60, %v385_v57  ;;  %v1902_v57 = vperm.slane %v1771_v62, 3 }
 0x133   :  { %v391_v63 = vmul.f32 %v386_v47, %v1879_v38 }
 0x139   :  { %v395_v2 = vpop.permute.xlu0 %394  ;;  %v423_v61 = vpop.permute.xlu2 %422 }
 0x141   :  { %v401_v9 = vpop.permute.xlu1 %400 }
 0x142   :  { %v404_v24 = vsel %vm149_vm1, %v401_v9, %v403_v59  ;;  %v407_v56 = vsel %vm149_vm1, %v395_v2, %v401_v9  ;;  %v1899_v59 = vperm.slane %v1771_v62, 1 }
 0x143   :  { %v409_v39 = vmul.f32 %v404_v24, %v1868_v23 }
 0x145   :  { %v491_v8 = vrot.slane %v409_v39, 4  ;;  %v157_v39 = vmul.f32 %v1868_v23, %v1758_v51 }
 0x149   :  { %v414_v0 = vpop.permute.xlu0 %413  ;;  %v441_v4 = vpop.permute.xlu2 %440 }
 0x14a   :  { %v416_v3 = vpop.permute.xlu1 %415 }
 0x14b   :  { %v425_v21 = vsel %vm165_vm2, %v416_v3, %v423_v61  ;;  %v417_v48 = vsel %vm165_vm2, %v414_v0, %v416_v3  ;;  %v355_v61 = vmul.f32 %v350_v43, %v1885_v42  ;;  %v485_v3 = vrot.slane %v373_v44, 4 }
 0x14c   :  { %v427_v31 = vmul.f32 %v425_v21, %v1794_v18  ;;  %v426_v0 = vmul.f32 %v417_v48, %v1787_v13  ;;  %v251_v48 = vrot.slane %v157_v39, 4 }
 0x14e   :  { %v502_v49 = vrot.slane %v427_v31, 4  ;;  %v501_v24 = vrot.slane %v426_v0, 4  ;;  %v495_v31 = vld.sshfl [vmem:[#allocation1] sm:$0xff pattern:$0x75316420] }
 0x150   :  { %v516_v9 = vsel %vm271_vm6, %v496_v55, %v502_v49  ;;  %v114_v55 = vmul.f32 %v1899_v59, %v1753_v46 }
 0x159   :  { %v432_v5 = vpop.permute.xlu0 %431  ;;  %v434_v12 = vpop.permute.xlu1 %433 }
 0x15a   :  { %v443_v36 = vsel %vm186_vm4, %v434_v12, %v441_v4  ;;  %v371_v4 = vsel %vm107_vm0, %v359_v1, %v365_v25  ;;  %v389_v1 = vsel %vm128_vm8, %v1856_v58, %v1858_v60  ;;  %v514_v25 = vsel %vm271_vm6, %v391_v63, %v491_v8 }
 0x15b   :  { %v445_v50 = vmul.f32 %v443_v36, %v1800_v20  ;;  %v512_v58 = vsel %vm271_vm6, %v355_v61, %v485_v3  ;;  %v115_v63 = vmul.f32 %v1874_v35, %v1750_v45 }
 0x15d   :  { %v245_v3 = vrot.slane %v115_v63, 4  ;;  %v566_v63 = vld [vmem:[%s2354_s5] sm:$0xff] }
 0x162   :  { %v470_v10 = vpop.permute.xlu2 %469 }
 0x169   :  { %v450_v14 = vpop.permute.xlu0 %449 }
 0x16a   :  { %v477_v15 = vpop.permute.xlu2 %476 }
 0x16b   :  { %v479_v16 = vsel %vm228_vm5, %v470_v10, %v477_v15  ;;  %v1910_v15 = vperm.slane %v1771_v62, 2  ;;  %v353_v62 = vsel %vm86_vm7, %v1852_v26, %v1854_v27 }
 0x16c   :  { %v481_v17 = vmul.f32 %v1816_v32, %v479_v16  ;;  %v408_v16 = vmul.f32 %v407_v56, %v1902_v57  ;;  %v354_v26 = vmul.f32 %v353_v62, %v1915_v22 }
 0x16e   :  { %1476 = vmatpush.msk.msra.mxu3 %vm271_vm6, %v481_v17 }
 0x171   :  { %v452_v33 = vpop.permute.xlu0 %451  ;;  %v459_v34 = vpop.permute.xlu1 %458 }
 0x172   :  { %v461_v37 = vsel %vm207_vm3, %v452_v33, %v459_v34  ;;  %v453_v40 = vsel %vm207_vm3, %v450_v14, %v452_v33  ;;  %v435_v14 = vsel %vm186_vm4, %v432_v5, %v434_v12  ;;  %v372_v12 = vmul.f32 %v371_v4, %v1899_v59  ;;  %v127_v30 = vpop.permute.xlu2 %126 }
 0x173   :  { %v463_v41 = vmul.f32 %v461_v37, %v1784_v11  ;;  %v462_v54 = vmul.f32 %v453_v40, %v1781_v6  ;;  %v444_v28 = vmul.f32 %v435_v14, %v1797_v19  ;;  %v390_v33 = vmul.f32 %v389_v1, %v1910_v15 }
 0x174   :  { %v490_v34 = vrot.slane %v408_v16, 4  ;;  %v156_v37 = vmul.f32 %v1902_v57, %v1761_v52  ;;  %v484_v27 = vrot.slane %v372_v12, 4  ;;  %v515_v40 = vsel %vm271_vm6, %v495_v31, %v501_v24 }
 0x175   :  { %v508_v53 = vrot.slane %v463_v41, 4  ;;  %v507_v17 = vrot.slane %v462_v54, 4  ;;  %v244_v4 = vrot.slane %v114_v55, 4 }
 0x176   :  { %v513_v47 = vsel %vm271_vm6, %v390_v33, %v490_v34  ;;  %v250_v52 = vrot.slane %v156_v37, 4 }
 0x177   :  { %v518_v7 = vsel %vm271_vm6, %v445_v50, %v508_v53  ;;  %v517_v36 = vsel %vm271_vm6, %v444_v28, %v507_v17  ;;  %v511_v50 = vsel %vm271_vm6, %v354_v26, %v484_v27 }
 0x178   :  { %557 = vmatpush.msra.mxu3 %v518_v7 }
 0x179   :  { %v468_v2 = vpop.permute.xlu1 %467  ;;  %v119_v60 = vpop.permute.xlu0 %118 }
 0x17a   :  { %v471_v21 = vsel %vm228_vm5, %v468_v2, %v470_v10  ;;  %558 = vmatpush.msra.mxu3 %v516_v9  ;;  %v62_v10 = vld [vmem:[%s2351_s2] sm:$0xff]  ;;  %v85_v8 = vpop.permute.xlu2 %84 }
 0x17b   :  { %v480_v5 = vmul.f32 %v1810_v29, %v471_v21 }
 0x17c   :  { %559 = vmatpush.msra.mxu3 %v514_v25 }
 0x17d   :  { %1474 = vmatpush.msk.msra.mxu2 %vm271_vm6, %v480_v5 }
 0x17e   :  { %560 = vmatpush.msra.mxu3 %v512_v58 }
 0x17f   :  { %537 = vmatpush.msra.mxu2 %v517_v36  ;;  %1477 = vmatmul.msk.f32.vlgmr.msra.gmra.mxu3 %vm285_vm9, %v62_v10 }
 0x181   :  { %v125_v41 = vpop.permute.xlu1 %124  ;;  %538 = vmatpush.msra.mxu2 %v515_v40  ;;  %v77_v56 = vpop.permute.xlu0 %76 }
 0x182   :  { %v132_v43 = vsel %vm128_vm8, %v119_v60, %v125_v41  ;;  %v129_v44 = vsel %vm128_vm8, %v125_v41, %v127_v30 }
 0x183   :  { %v135_v51 = vmul.f32 %v1910_v15, %v132_v43  ;;  %v136_v49 = vmul.f32 %v1879_v38, %v129_v44  ;;  %539 = vmatpush.msra.mxu2 %v513_v47 }
 0x185   :  { %540 = vmatpush.msra.mxu2 %v511_v50  ;;  %v274_v53 = vsel %vm271_vm6, %v135_v51, %v250_v52  ;;  %v275_v54 = vsel %vm271_vm6, %v136_v49, %v251_v48  ;;  %v565_v49 = vld [vmem:[%s2353_s4] sm:$0xff] }
 0x186   :  { %309 = vmatpush.msra.mxu0 %v274_v53  ;;  %329 = vmatpush.msra.mxu1 %v275_v54 }
 0x187   :  { %1475 = vmatmul.msk.f32.vlgmr.msra.gmra.mxu2 %vm285_vm9, %v62_v10 }
 0x189   :  { %v83_v7 = vpop.permute.xlu1 %82  ;;  %v283_v45 = vpop.permute.xlu0 %282 }
 0x18a   :  { %v90_v61 = vsel %vm86_vm7, %v77_v56, %v83_v7  ;;  %v87_v0 = vsel %vm86_vm7, %v83_v7, %v85_v8 }
 0x18b   :  { %v93_v14 = vmul.f32 %v1915_v22, %v90_v61  ;;  %v94_v2 = vmul.f32 %v1885_v42, %v87_v0 }
 0x18d   :  { %v272_v46 = vsel %vm271_vm6, %v93_v14, %v244_v4  ;;  %v273_v9 = vsel %vm271_vm6, %v94_v2, %v245_v3 }
 0x18e   :  { %310 = vmatpush.msra.mxu0 %v272_v46  ;;  %330 = vmatpush.msra.mxu1 %v273_v9 }
 0x18f   :  { %1470 = vmatmul.msk.f32.vlgmr.msra.gmra.mxu0 %vm285_vm9, %v62_v10  ;;  %1472 = vmatmul.msk.f32.vlgmr.msra.gmra.mxu1 %vm285_vm9, %v62_v10 }
 0x202   :  { %v562_v16 = vpop.f32.mrf.mxu3 }
 0x203   :  { %v563_v17 = vadd.f32 %v562_v16, %v283_v45 }
 0x205   :  { %v572_v62 = vmul.f32 %v563_v17, %v563_v17 }
 0x20a   :  { %v542_v21 = vpop.f32.mrf.mxu2 }
 0x20b   :  { %v543_v1 = vadd.f32 %v542_v21, %v283_v45 }
 0x20c   :  { %v312_v25 = vpop.f32.mrf.mxu0  ;;  %v332_v5 = vpop.f32.mrf.mxu1 }
 0x20d   :  { %v313_v12 = vadd.f32 %v312_v25, %v283_v45  ;;  %v333_v24 = vadd.f32 %v332_v5, %v283_v45  ;;  %v571_v28 = vmul.f32 %v543_v1, %v543_v1 }
 0x20f   :  { %v567_v58 = vmul.f32 %v313_v12, %v313_v12  ;;  %v568_v60 = vmul.f32 %v333_v24, %v333_v24  ;;  %v569_v30 = vadd.f32 %v543_v1, %v313_v12  ;;  %v570_v31 = vadd.f32 %v563_v17, %v333_v24 }
 0x211   :  { %v575_v33 = vadd.f32 %v570_v31, %v569_v30  ;;  %v573_v34 = vadd.f32 %v571_v28, %v567_v58  ;;  %v574_v36 = vadd.f32 %v572_v62, %v568_v60 }
 0x213   :  { %576 = vadd.xlane.f32.xlu1 %v575_v33  ;;  %v579_v10 = vadd.f32 %v574_v36, %v573_v34 }
 0x215   :  { %580 = vadd.xlane.f32.xlu2 %v579_v10 }
 0x286   :  { %v577_v37 = vpop.xlane.xlu1 %576 }
 0x287   :  { %v578_v39 = vmul.f32 0.001953125, %v577_v37 }
 0x288   :  { %v581_v26 = vpop.xlane.xlu2 %580 }
 0x289   :  { %v583_v27 = vmul.f32 %v578_v39, %v578_v39  ;;  %v582_v40 = vmul.f32 0.001953125, %v581_v26 }
 0x28b   :  { %v584_v41 = vsub.f32 %v582_v40, %v583_v27 }
 0x28d   :  { %v585_v43 = vadd.f32 1e-05, %v584_v41 }
 0x28f   :  { %1516 = vrsqrt.f32 %v585_v43  ;;  %vm592_vm11 = vweird.f32 %v585_v43 }
 0x295   :  { %v1517_v44 = vpop.eup %1516 }
 0x296   :  { %v587_v47 = vmul.f32 %v1517_v44, %v585_v43  ;;  %vm593_vm10 = vweird.f32 %v1517_v44 }
 0x297   :  { %vm594_vm12 = vmor %vm592_vm11, %vm593_vm10 }
 0x298   :  { %v588_v52 = vmul.f32 %v1517_v44, %v587_v47 }
 0x29a   :  { %v589_v48 = vmul.f32 0.5, %v588_v52 }
 0x29c   :  { %v590_v51 = vsub.f32 1.5, %v589_v48 }
 0x29e   :  { %v591_v50 = vmul.f32 %v1517_v44, %v590_v51 }
 0x2a0   :  { %v595_v53 = vsel %vm594_vm12, %v1517_v44, %v591_v50 }
 0x2a1   :  { %v596_v54 = vmul.f32 %v595_v53, %v565_v49 }
 0x2a3   :  { %601 = vperm.xlu0 %1512, %v596_v54   ;;  %v597_v55 = vmul.f32 %v596_v54, %v578_v39 }
 0x2a5   :  { %v598_v56 = vsub.f32 %v566_v63, %v597_v55 }
 0x2ab   :  { %608 = vperm.xlu0 %1512, %v598_v56  }
 0x315   :  { %v602_v8 = vpop.permute.xlu0 %601 }
 0x316   :  { %v613_v7 = vmul.f32 %v602_v8, %v543_v1  ;;  %v614_v61 = vmul.f32 %v602_v8, %v563_v17  ;;  %v605_v46 = vmul.f32 %v602_v8, %v333_v24  ;;  %v604_v16 = vmul.f32 %v602_v8, %v313_v12 }
 0x31d   :  { %v609_v0 = vpop.permute.xlu0 %608 }
 0x31e   :  { %v615_v4 = vadd.f32 %v613_v7, %v609_v0  ;;  %v616_v3 = vadd.f32 %v614_v61, %v609_v0  ;;  %v612_v9 = vadd.f32 %v609_v0, %v605_v46  ;;  %v611_v17 = vadd.f32 %v609_v0, %v604_v16 }
 0x320   :  { %v1968_v14 = vmax.f32 %v615_v4, 0.0  ;;  %v1970_v2 = vmax.f32 %v616_v3, 0.0  ;;  %v1978_v45 = vmax.f32 %v612_v9, 0.0  ;;  %v1986_v21 = vmax.f32 %v611_v17, 0.0 }
 0x322   :  { %830 = vrot.lane.b32.xlu1 %v1970_v2, %s1589_s15  ;;  %828 = vrot.lane.b32.xlu2 %v1968_v14, %s1589_s15 }
 0x323   :  { %839 = vrot.lane.b32.xlu0 %v1968_v14, %s1590_s16 }
 0x32a   :  { %806 = vrot.lane.b32.xlu1 %v1968_v14, %s1587_s13  ;;  %702 = vrot.lane.b32.xlu2 %v1978_v45, %s1590_s16 }
 0x32b   :  { %841 = vrot.lane.b32.xlu0 %v1970_v2, %s1590_s16 }
 0x332   :  { %691 = vrot.lane.b32.xlu1 %v1978_v45, %s1589_s15  ;;  %689 = vrot.lane.b32.xlu2 %v1986_v21, %s1589_s15 }
 0x333   :  { %817 = vrot.lane.b32.xlu0 %v1968_v14, %s1588_s14 }
 0x33a   :  { %795 = vrot.lane.b32.xlu1 %v1970_v2, %s1586_s30  ;;  %680 = vrot.lane.b32.xlu2 %v1978_v45, %s1588_s14 }
 0x33b   :  { %819 = vrot.lane.b32.xlu0 %v1970_v2, %s1588_s14 }
 0x342   :  { %669 = vrot.lane.b32.xlu1 %v1978_v45, %s1587_s13  ;;  %667 = vrot.lane.b32.xlu2 %v1986_v21, %s1587_s13 }
 0x343   :  { %700 = vrot.lane.b32.xlu0 %v1986_v21, %s1590_s16 }
 0x34a   :  { %773 = vrot.lane.b32.xlu1 %v1970_v2, %s1585_s10  ;;  %787 = vrot.lane.b32.xlu2 %v1968_v14, %s1592_s0 }
 0x34b   :  { %808 = vrot.lane.b32.xlu0 %v1970_v2, %s1587_s13 }
 0x352   :  { %659 = vrot.lane.b32.xlu1 %v1986_v21, %s1586_s30  ;;  %656 = vrot.lane.b32.xlu2 %v1978_v45, %s1586_s30 }
 0x353   :  { %678 = vrot.lane.b32.xlu0 %v1986_v21, %s1588_s14 }
 0x35a   :  { %645 = vrot.lane.b32.xlu1 %v1978_v45, %s1592_s0  ;;  %765 = vrot.lane.b32.xlu2 %v1968_v14, %s1591_s19 }
 0x35b   :  { %798 = vrot.lane.b32.xlu0 %v1968_v14, %s1586_s30 }
 0x362   :  { %637 = vrot.lane.b32.xlu1 %v1986_v21, %s1585_s10  ;;  %634 = vrot.lane.b32.xlu2 %v1978_v45, %s1585_s10 }
 0x363   :  { %784 = vrot.lane.b32.xlu0 %v1970_v2, %s1592_s0 }
 0x36a   :  { %626 = vrot.lane.b32.xlu2 %v1986_v21, %s1591_s19 }
 0x36b   :  { %776 = vrot.lane.b32.xlu0 %v1968_v14, %s1585_s10 }
 0x373   :  { %761 = vrot.lane.b32.xlu0 %v1970_v2, %s1591_s19 }
 0x37b   :  { %648 = vrot.lane.b32.xlu0 %v1986_v21, %s1592_s0 }
 0x37c   :  { %v829_v1 = vpop.permute.xlu2 %828 }
 0x383   :  { %622 = vrot.lane.b32.xlu0 %v1978_v45, %s1591_s19 }
 0x384   :  { %v703_v12 = vpop.permute.xlu2 %702 }
 0x38c   :  { %v690_v34 = vpop.permute.xlu2 %689 }
 0x394   :  { %v831_v25 = vpop.permute.xlu1 %830  ;;  %v681_v26 = vpop.permute.xlu2 %680 }
 0x395   :  { %v840_v5 = vpop.permute.xlu0 %839  ;;  %v832_v62 = vsel %vm207_vm3, %v829_v1, %v831_v25  ;;  %v836_v58 = vsel %vm207_vm3, %v831_v25, %v829_v1 }
 0x396   :  { %v837_v36 = vmul.f32 %v832_v62, %v1781_v6  ;;  %v838_v10 = vmul.f32 %v836_v58, %v1784_v11 }
 0x39c   :  { %v807_v24 = vpop.permute.xlu1 %806  ;;  %v668_v48 = vpop.permute.xlu2 %667 }
 0x39d   :  { %v842_v28 = vpop.permute.xlu0 %841 }
 0x39e   :  { %v843_v60 = vsel %vm228_vm5, %v840_v5, %v842_v28  ;;  %v847_v30 = vsel %vm228_vm5, %v842_v28, %v840_v5 }
 0x39f   :  { %v848_v31 = vmul.f32 %v1810_v29, %v843_v60  ;;  %v849_v33 = vmul.f32 %v1816_v32, %v847_v30 }
 0x3a1   :  { %857 = vmatpush.msrb.mxu2 %v848_v31  ;;  %877 = vmatpush.msrb.mxu3 %v849_v33 }
 0x3a3   :  { %858 = vmatpush.msrb.mxu2 %v837_v36  ;;  %878 = vmatpush.msrb.mxu3 %v838_v10 }
 0x3a4   :  { %v692_v37 = vpop.permute.xlu1 %691  ;;  %v788_v3 = vpop.permute.xlu2 %787 }
 0x3a5   :  { %v818_v39 = vpop.permute.xlu0 %817  ;;  %v693_v49 = vsel %vm207_vm3, %v690_v34, %v692_v37  ;;  %v697_v50 = vsel %vm207_vm3, %v692_v37, %v690_v34 }
 0x3a6   :  { %v698_v56 = vmul.f32 %v693_v49, %v1781_v6  ;;  %v699_v8 = vmul.f32 %v697_v50, %v1784_v11 }
 0x3ac   :  { %v796_v27 = vpop.permute.xlu1 %795  ;;  %v657_v62 = vpop.permute.xlu2 %656 }
 0x3ad   :  { %v820_v40 = vpop.permute.xlu0 %819 }
 0x3ae   :  { %v821_v41 = vsel %vm186_vm4, %v818_v39, %v820_v40  ;;  %v825_v43 = vsel %vm186_vm4, %v820_v40, %v818_v39 }
 0x3af   :  { %v826_v44 = vmul.f32 %v821_v41, %v1797_v19  ;;  %v827_v47 = vmul.f32 %v825_v43, %v1800_v20 }
 0x3b1   :  { %859 = vmatpush.msrb.mxu2 %v826_v44  ;;  %879 = vmatpush.msrb.mxu3 %v827_v47 }
 0x3b4   :  { %v670_v52 = vpop.permute.xlu1 %669 }
 0x3b5   :  { %v701_v51 = vpop.permute.xlu0 %700  ;;  %v671_v17 = vsel %vm165_vm2, %v668_v48, %v670_v52  ;;  %v675_v1 = vsel %vm165_vm2, %v670_v52, %v668_v48  ;;  %v766_v48 = vpop.permute.xlu2 %765 }
 0x3b6   :  { %v704_v53 = vsel %vm228_vm5, %v701_v51, %v703_v12  ;;  %v708_v54 = vsel %vm228_vm5, %v703_v12, %v701_v51 }
 0x3b7   :  { %v709_v55 = vmul.f32 %v1810_v29, %v704_v53  ;;  %v710_v63 = vmul.f32 %v1816_v32, %v708_v54 }
 0x3b9   :  { %727 = vmatpush.msrb.mxu0 %v709_v55  ;;  %747 = vmatpush.msrb.mxu1 %v710_v63  ;;  %v64_v63 = vld [vmem:[%s2355_s6] sm:$0xff] }
 0x3bb   :  { %728 = vmatpush.msrb.mxu0 %v698_v56  ;;  %748 = vmatpush.msrb.mxu1 %v699_v8 }
 0x3bc   :  { %v774_v7 = vpop.permute.xlu1 %773 }
 0x3bd   :  { %v809_v61 = vpop.permute.xlu0 %808  ;;  %v635_v56 = vpop.permute.xlu2 %634 }
 0x3be   :  { %v810_v0 = vsel %vm165_vm2, %v807_v24, %v809_v61  ;;  %v814_v4 = vsel %vm165_vm2, %v809_v61, %v807_v24 }
 0x3bf   :  { %v815_v46 = vmul.f32 %v810_v0, %v1787_v13  ;;  %v816_v9 = vmul.f32 %v814_v4, %v1794_v18 }
 0x3c1   :  { %860 = vmatpush.msrb.mxu2 %v815_v46  ;;  %880 = vmatpush.msrb.mxu3 %v816_v9 }
 0x3c3   :  { %861 = vmatpush.msrb.mxu2 %v1968_v14  ;;  %881 = vmatpush.msrb.mxu3 %v1970_v2  ;;  %v676_v14 = vmul.f32 %v671_v17, %v1787_v13  ;;  %v677_v2 = vmul.f32 %v675_v1, %v1794_v18 }
 0x3c4   :  { %v660_v12 = vpop.permute.xlu1 %659 }
 0x3c5   :  { %v679_v16 = vpop.permute.xlu0 %678  ;;  %v661_v58 = vsel %vm149_vm1, %v660_v12, %v657_v62  ;;  %v664_v60 = vsel %vm149_vm1, %v657_v62, %v660_v12  ;;  %v627_v1 = vpop.permute.xlu2 %626 }
 0x3c6   :  { %v682_v25 = vsel %vm186_vm4, %v679_v16, %v681_v26  ;;  %v686_v5 = vsel %vm186_vm4, %v681_v26, %v679_v16  ;;  %v665_v31 = vmul.f32 %v664_v60, %v1902_v57  ;;  %v666_v33 = vmul.f32 %v661_v58, %v1868_v23 }
 0x3c7   :  { %v687_v24 = vmul.f32 %v682_v25, %v1797_v19  ;;  %v688_v28 = vmul.f32 %v686_v5, %v1800_v20 }
 0x3c9   :  { %729 = vmatpush.msrb.mxu0 %v687_v24  ;;  %749 = vmatpush.msrb.mxu1 %v688_v28 }
 0x3cb   :  { %730 = vmatpush.msrb.mxu0 %v676_v14  ;;  %750 = vmatpush.msrb.mxu1 %v677_v2 }
 0x3cc   :  { %v646_v51 = vpop.permute.xlu1 %645 }
 0x3cd   :  { %731 = vmatpush.msrb.mxu0 %v1986_v21  ;;  %751 = vmatpush.msrb.mxu1 %v1978_v45  ;;  %v799_v30 = vpop.permute.xlu0 %798 }
 0x3ce   :  { %v800_v34 = vsel %vm149_vm1, %v799_v30, %v796_v27  ;;  %v803_v36 = vsel %vm149_vm1, %v796_v27, %v799_v30  ;;  %v65_v27 = vld [vmem:[%s2356_s7] sm:$0xff] }
 0x3cf   :  { %732 = vmatpush.msrb.mxu0 %v665_v31  ;;  %752 = vmatpush.msrb.mxu1 %v666_v33  ;;  %v804_v10 = vmul.f32 %v803_v36, %v1902_v57  ;;  %v805_v37 = vmul.f32 %v800_v34, %v1868_v23 }
 0x3d0   :  { %713 = vperm.xlu1 %1513, %v65_v27  }
 0x3d1   :  { %862 = vmatpush.msrb.mxu2 %v804_v10  ;;  %882 = vmatpush.msrb.mxu3 %v805_v37 }
 0x3d4   :  { %v638_v8 = vpop.permute.xlu1 %637 }
 0x3d5   :  { %v785_v21 = vpop.permute.xlu0 %784  ;;  %v639_v61 = vsel %vm107_vm0, %v638_v8, %v635_v56  ;;  %v642_v0 = vsel %vm107_vm0, %v635_v56, %v638_v8  ;;  %v890_v56 = vld [vmem:[%s2357_s8] sm:$0xff] }
 0x3d6   :  { %v789_v45 = vsel %vm128_vm8, %v788_v3, %v785_v21  ;;  %v792_v39 = vsel %vm128_vm8, %v785_v21, %v788_v3  ;;  %v643_v16 = vmul.f32 %v642_v0, %v1899_v59  ;;  %v644_v17 = vmul.f32 %v639_v61, %v1874_v35 }
 0x3d7   :  { %v793_v26 = vmul.f32 %v792_v39, %v1910_v15  ;;  %v794_v40 = vmul.f32 %v789_v45, %v1879_v38 }
 0x3d9   :  { %863 = vmatpush.msrb.mxu2 %v793_v26  ;;  %883 = vmatpush.msrb.mxu3 %v794_v40 }
 0x3dd   :  { %v777_v41 = vpop.permute.xlu0 %776 }
 0x3de   :  { %v778_v43 = vsel %vm107_vm0, %v777_v41, %v774_v7  ;;  %v781_v44 = vsel %vm107_vm0, %v774_v7, %v777_v41 }
 0x3df   :  { %v782_v47 = vmul.f32 %v781_v44, %v1899_v59  ;;  %v783_v52 = vmul.f32 %v778_v43, %v1874_v35 }
 0x3e1   :  { %864 = vmatpush.msrb.mxu2 %v782_v47  ;;  %884 = vmatpush.msrb.mxu3 %v783_v52 }
 0x3e5   :  { %v762_v49 = vpop.permute.xlu0 %761 }
 0x3e6   :  { %v767_v50 = vsel %vm86_vm7, %v766_v48, %v762_v49  ;;  %v770_v53 = vsel %vm86_vm7, %v762_v49, %v766_v48 }
 0x3e7   :  { %v771_v54 = vmul.f32 %v770_v53, %v1915_v22  ;;  %v772_v55 = vmul.f32 %v767_v50, %v1885_v42 }
 0x3e9   :  { %865 = vmatpush.msrb.mxu2 %v771_v54  ;;  %885 = vmatpush.msrb.mxu3 %v772_v55 }
 0x3ea   :  { %1480 = vmatmul.msk.f32.vlgmr.msrb.gmra.mxu2 %vm716_vm13, %v64_v63  ;;  %1481 = vmatmul.msk.f32.vlgmr.msrb.gmra.mxu3 %vm716_vm13, %v64_v63 }
 0x3ed   :  { %v649_v7 = vpop.permute.xlu0 %648 }
 0x3ee   :  { %v650_v4 = vsel %vm128_vm8, %v649_v7, %v646_v51  ;;  %v653_v3 = vsel %vm128_vm8, %v646_v51, %v649_v7 }
 0x3ef   :  { %v654_v46 = vmul.f32 %v653_v3, %v1910_v15  ;;  %v655_v9 = vmul.f32 %v650_v4, %v1879_v38  ;;  %v891_v4 = vld [vmem:[%s2358_s9] sm:$0xff] }
 0x3f1   :  { %733 = vmatpush.msrb.mxu0 %v654_v46  ;;  %753 = vmatpush.msrb.mxu1 %v655_v9 }
 0x3f3   :  { %734 = vmatpush.msrb.mxu0 %v643_v16  ;;  %754 = vmatpush.msrb.mxu1 %v644_v17 }
 0x3f5   :  { %v623_v25 = vpop.permute.xlu0 %622 }
 0x3f6   :  { %v628_v5 = vsel %vm86_vm7, %v627_v1, %v623_v25  ;;  %v631_v12 = vsel %vm86_vm7, %v623_v25, %v627_v1 }
 0x3f7   :  { %v632_v24 = vmul.f32 %v631_v12, %v1915_v22  ;;  %v633_v28 = vmul.f32 %v628_v5, %v1885_v42  ;;  %v69_v5 = vld [vmem:[%s2360_s11] sm:$0xff] }
 0x3f9   :  { %735 = vmatpush.msrb.mxu0 %v632_v24  ;;  %755 = vmatpush.msrb.mxu1 %v633_v28 }
 0x3fa   :  { %1478 = vmatmul.msk.f32.vlgmr.msrb.gmra.mxu0 %vm716_vm13, %v64_v63  ;;  %1479 = vmatmul.msk.f32.vlgmr.msrb.gmra.mxu1 %vm716_vm13, %v64_v63 }
 0x442   :  { %v714_v62 = vpop.permute.xlu1 %713 }
 0x46d   :  { %v867_v14 = vpop.f32.mrf.mxu2  ;;  %v887_v2 = vpop.f32.mrf.mxu3 }
 0x46e   :  { %v2118_v58 = vadd.f32 %v867_v14, %v714_v62  ;;  %v2120_v60 = vadd.f32 %v887_v2, %v714_v62  ;;  %v70_v14 = vld [vmem:[%s2360_s11 + $0x8] sm:$0xff]  ;;  %v71_v2 = vld [vmem:[%s2360_s11 + $0x10] sm:$0xff] }
 0x470   :  { %v896_v36 = vmul.f32 %v2118_v58, %v2118_v58  ;;  %v897_v10 = vmul.f32 %v2120_v60, %v2120_v60 }
 0x477   :  { %v737_v30 = vpop.f32.mrf.mxu0  ;;  %v757_v31 = vpop.f32.mrf.mxu1 }
 0x478   :  { %v738_v33 = vadd.f32 %v737_v30, %v714_v62  ;;  %v758_v34 = vadd.f32 %v757_v31, %v714_v62 }
 0x47a   :  { %v892_v37 = vmul.f32 %v738_v33, %v738_v33  ;;  %v893_v21 = vmul.f32 %v758_v34, %v758_v34  ;;  %v894_v45 = vadd.f32 %v2118_v58, %v738_v33  ;;  %v895_v39 = vadd.f32 %v2120_v60, %v758_v34 }
 0x47c   :  { %v900_v26 = vadd.f32 %v895_v39, %v894_v45  ;;  %v898_v40 = vadd.f32 %v896_v36, %v892_v37  ;;  %v899_v27 = vadd.f32 %v897_v10, %v893_v21 }
 0x47e   :  { %901 = vadd.xlane.f32.xlu0 %v900_v26  ;;  %v904_v41 = vadd.f32 %v899_v27, %v898_v40 }
 0x480   :  { %905 = vadd.xlane.f32.xlu2 %v904_v41 }
 0x4f1   :  { %v902_v43 = vpop.xlane.xlu0 %901 }
 0x4f2   :  { %v903_v44 = vmul.f32 0.001953125, %v902_v43 }
 0x4f3   :  { %v906_v47 = vpop.xlane.xlu2 %905 }
 0x4f4   :  { %v908_v52 = vmul.f32 %v903_v44, %v903_v44  ;;  %v907_v48 = vmul.f32 0.001953125, %v906_v47 }
 0x4f6   :  { %v909_v51 = vsub.f32 %v907_v48, %v908_v52 }
 0x4f8   :  { %v910_v49 = vadd.f32 1e-05, %v909_v51 }
 0x4fa   :  { %1518 = vrsqrt.f32 %v910_v49  ;;  %vm917_vm15 = vweird.f32 %v910_v49 }
 0x500   :  { %v1519_v50 = vpop.eup %1518 }
 0x501   :  { %v912_v53 = vmul.f32 %v1519_v50, %v910_v49  ;;  %vm918_vm14 = vweird.f32 %v1519_v50 }
 0x502   :  { %vm919_vm6 = vmor %vm917_vm15, %vm918_vm14 }
 0x503   :  { %v913_v54 = vmul.f32 %v1519_v50, %v912_v53 }
 0x505   :  { %v914_v55 = vmul.f32 0.5, %v913_v54 }
 0x507   :  { %v915_v63 = vsub.f32 1.5, %v914_v55 }
 0x509   :  { %v916_v8 = vmul.f32 %v1519_v50, %v915_v63 }
 0x50b   :  { %v920_v7 = vsel %vm919_vm6, %v1519_v50, %v916_v8 }
 0x50c   :  { %v921_v61 = vmul.f32 %v920_v7, %v890_v56 }
 0x50e   :  { %926 = vperm.xlu1 %1513, %v921_v61   ;;  %v922_v0 = vmul.f32 %v921_v61, %v903_v44 }
 0x510   :  { %v923_v3 = vsub.f32 %v891_v4, %v922_v0 }
 0x516   :  { %933 = vperm.xlu1 %1513, %v923_v3  }
 0x580   :  { %v927_v46 = vpop.permute.xlu1 %926 }
 0x581   :  { %v929_v9 = vmul.f32 %v927_v46, %v738_v33  ;;  %v930_v16 = vmul.f32 %v927_v46, %v758_v34  ;;  %v939_v12 = vmul.f32 %v927_v46, %v2120_v60  ;;  %v938_v28 = vmul.f32 %v927_v46, %v2118_v58 }
 0x588   :  { %v934_v17 = vpop.permute.xlu1 %933 }
 0x589   :  { %v2134_v1 = vadd.f32 %v934_v17, %v929_v9  ;;  %v2136_v25 = vadd.f32 %v934_v17, %v930_v16  ;;  %v2168_v24 = vadd.f32 %v939_v12, %v934_v17  ;;  %v2175_v62 = vadd.f32 %v938_v28, %v934_v17 }
 0x58b   :  { %1012 = vrot.lane.b32.xlu0 %v2136_v25, %s1589_s15  ;;  %999 = vrot.lane.b32.xlu2 %v2134_v1, %s1588_s14 }
 0x58c   :  { %1021 = vrot.lane.b32.xlu1 %v2134_v1, %s1590_s16 }
 0x593   :  { %977 = vrot.lane.b32.xlu0 %v2136_v25, %s1586_s30  ;;  %980 = vrot.lane.b32.xlu2 %v2134_v1, %s1586_s30 }
 0x594   :  { %1023 = vrot.lane.b32.xlu1 %v2136_v25, %s1590_s16 }
 0x59b   :  { %969 = vrot.lane.b32.xlu0 %v2134_v1, %s1592_s0  ;;  %955 = vrot.lane.b32.xlu2 %v2136_v25, %s1585_s10 }
 0x59c   :  { %1010 = vrot.lane.b32.xlu1 %v2134_v1, %s1589_s15 }
 0x5a3   :  { %943 = vrot.lane.b32.xlu0 %v2136_v25, %s1591_s19  ;;  %947 = vrot.lane.b32.xlu2 %v2134_v1, %s1591_s19 }
 0x5a4   :  { %1001 = vrot.lane.b32.xlu1 %v2136_v25, %s1588_s14 }
 0x5ab   :  { %1034 = vperm.xlu0 %1512, %v69_v5  }
 0x5ac   :  { %988 = vrot.lane.b32.xlu1 %v2134_v1, %s1587_s13 }
 0x5b3   :  { %1289 = vrot.lane.b32.xlu0 %v2168_v24, %s1590_s16 }
 0x5b4   :  { %990 = vrot.lane.b32.xlu1 %v2136_v25, %s1587_s13 }
 0x5bb   :  { %1276 = vrot.lane.b32.xlu0 %v2175_v62, %s1589_s15 }
 0x5bc   :  { %966 = vrot.lane.b32.xlu1 %v2136_v25, %s1592_s0 }
 0x5c3   :  { %1278 = vrot.lane.b32.xlu0 %v2168_v24, %s1589_s15 }
 0x5c4   :  { %958 = vrot.lane.b32.xlu1 %v2134_v1, %s1585_s10 }
 0x5cb   :  { %1265 = vrot.lane.b32.xlu0 %v2175_v62, %s1588_s14 }
 0x5cc   :  { %1039 = vperm.xlu1 %1513, %v70_v14  }
 0x5d3   :  { %1267 = vrot.lane.b32.xlu0 %v2168_v24, %s1588_s14 }
 0x5d4   :  { %1287 = vrot.lane.b32.xlu1 %v2175_v62, %s1590_s16 }
 0x5db   :  { %1256 = vrot.lane.b32.xlu0 %v2168_v24, %s1587_s13 }
 0x5dc   :  { %1044 = vperm.xlu1 %1513, %v71_v2  }
 0x5e3   :  { %1243 = vrot.lane.b32.xlu0 %v2168_v24, %s1586_s30 }
 0x5e5   :  { %v1000_v26 = vpop.permute.xlu2 %999 }
 0x5eb   :  { %1246 = vrot.lane.b32.xlu0 %v2175_v62, %s1586_s30 }
 0x5ed   :  { %v981_v47 = vpop.permute.xlu2 %980 }
 0x5f3   :  { %1235 = vrot.lane.b32.xlu0 %v2175_v62, %s1592_s0 }
 0x5f5   :  { %v956_v63 = vpop.permute.xlu2 %955 }
 0x5fb   :  { %1224 = vrot.lane.b32.xlu0 %v2175_v62, %s1585_s10 }
 0x5fd   :  { %v1013_v36 = vpop.permute.xlu0 %1012  ;;  %v948_v9 = vpop.permute.xlu2 %947 }
 0x5fe   :  { %v1022_v58 = vpop.permute.xlu1 %1021 }
 0x605   :  { %v978_v44 = vpop.permute.xlu0 %977 }
 0x606   :  { %v1024_v60 = vpop.permute.xlu1 %1023  ;;  %v982_v53 = vsel %vm149_vm1, %v981_v47, %v978_v44  ;;  %v985_v54 = vsel %vm149_vm1, %v978_v44, %v981_v47 }
 0x607   :  { %v1025_v30 = vsel %vm228_vm5, %v1022_v58, %v1024_v60  ;;  %v1029_v31 = vsel %vm228_vm5, %v1024_v60, %v1022_v58  ;;  %v986_v56 = vmul.f32 %v985_v54, %v1902_v57  ;;  %v987_v8 = vmul.f32 %v982_v53, %v1868_v23  ;;  %v2241_v58 = vld [vmem:[#allocation2] sm:$0xff]  ;;  %v2247_v60 = vld [vmem:[#allocation2 + $0x8] sm:$0xff] }
 0x608   :  { %v1030_v33 = vmul.f32 %v1810_v29, %v1025_v30  ;;  %v1031_v34 = vmul.f32 %v1816_v32, %v1029_v31  ;;  %v2253_v30 = vld [vmem:[#allocation2 + $0x10] sm:$0xff] }
 0x60a   :  { %1063 = vmatpush.msra.mxu0 %v1030_v33  ;;  %1089 = vmatpush.msra.mxu1 %v1031_v34 }
 0x60d   :  { %v970_v55 = vpop.permute.xlu0 %969 }
 0x60e   :  { %v1011_v10 = vpop.permute.xlu1 %1010 }
 0x60f   :  { %v1014_v37 = vsel %vm207_vm3, %v1011_v10, %v1013_v36  ;;  %v1018_v21 = vsel %vm207_vm3, %v1013_v36, %v1011_v10 }
 0x610   :  { %v1019_v45 = vmul.f32 %v1014_v37, %v1781_v6  ;;  %v1020_v39 = vmul.f32 %v1018_v21, %v1784_v11 }
 0x612   :  { %1064 = vmatpush.msra.mxu0 %v1019_v45  ;;  %1090 = vmatpush.msra.mxu1 %v1020_v39 }
 0x615   :  { %v944_v46 = vpop.permute.xlu0 %943 }
 0x616   :  { %v1002_v40 = vpop.permute.xlu1 %1001  ;;  %v949_v17 = vsel %vm86_vm7, %v948_v9, %v944_v46 }
 0x617   :  { %v1003_v29 = vsel %vm186_vm4, %v1000_v26, %v1002_v40  ;;  %v1007_v32 = vsel %vm186_vm4, %v1002_v40, %v1000_v26  ;;  %v954_v2 = vmul.f32 %v949_v17, %v1885_v42 }
 0x618   :  { %v1008_v27 = vmul.f32 %v1003_v29, %v1797_v19  ;;  %v1009_v41 = vmul.f32 %v1007_v32, %v1800_v20 }
 0x61a   :  { %1065 = vmatpush.msra.mxu0 %v1008_v27  ;;  %1091 = vmatpush.msra.mxu1 %v1009_v41 }
 0x61d   :  { %v2259_v31 = vpop.permute.xlu0 %1034 }
 0x61e   :  { %v989_v43 = vpop.permute.xlu1 %988 }
 0x625   :  { %v1290_v33 = vpop.permute.xlu0 %1289 }
 0x626   :  { %v991_v52 = vpop.permute.xlu1 %990 }
 0x627   :  { %v992_v48 = vsel %vm165_vm2, %v989_v43, %v991_v52  ;;  %v996_v51 = vsel %vm165_vm2, %v991_v52, %v989_v43 }
 0x628   :  { %v997_v49 = vmul.f32 %v992_v48, %v1787_v13  ;;  %v998_v50 = vmul.f32 %v996_v51, %v1794_v18 }
 0x62a   :  { %1066 = vmatpush.msra.mxu0 %v997_v49  ;;  %1092 = vmatpush.msra.mxu1 %v998_v50 }
 0x62c   :  { %1067 = vmatpush.msra.mxu0 %v2134_v1  ;;  %1093 = vmatpush.msra.mxu1 %v2136_v25  ;;  %v952_v1 = vsel %vm86_vm7, %v944_v46, %v948_v9 }
 0x62d   :  { %v953_v14 = vmul.f32 %v952_v1, %v1915_v22  ;;  %v1277_v34 = vpop.permute.xlu0 %1276 }
 0x62e   :  { %1068 = vmatpush.msra.mxu0 %v986_v56  ;;  %1094 = vmatpush.msra.mxu1 %v987_v8  ;;  %v967_v7 = vpop.permute.xlu1 %966  ;;  %v1529_v56 = vld [vmem:[%s2350_s1 + $0x18] ss:$0 sm:$0xff] }
 0x62f   :  { %v971_v61 = vsel %vm128_vm8, %v970_v55, %v967_v7  ;;  %v974_v0 = vsel %vm128_vm8, %v967_v7, %v970_v55  ;;  %v1528_v55 = vld [vmem:[%s2350_s1 + $0x10] ss:$0 sm:$0xff]  ;;  %s1594_s1 = smov [#allocation5]  }
 0x630   :  { %v975_v4 = vmul.f32 %v974_v0, %v1910_v15  ;;  %v976_v3 = vmul.f32 %v971_v61, %v1879_v38 }
 0x632   :  { %1069 = vmatpush.msra.mxu0 %v975_v4  ;;  %1095 = vmatpush.msra.mxu1 %v976_v3 }
 0x635   :  { %v1279_v36 = vpop.permute.xlu0 %1278 }
 0x636   :  { %v959_v16 = vpop.permute.xlu1 %958  ;;  %v1280_v49 = vsel %vm207_vm3, %v1277_v34, %v1279_v36  ;;  %v1284_v50 = vsel %vm207_vm3, %v1279_v36, %v1277_v34  ;;  %vm1149_vm3 = vcmask 64512  }
 0x637   :  { %v960_v25 = vsel %vm107_vm0, %v959_v16, %v956_v63  ;;  %v963_v5 = vsel %vm107_vm0, %v956_v63, %v959_v16  ;;  %v1285_v0 = vmul.f32 %v1280_v49, %v1781_v6  ;;  %v1286_v4 = vmul.f32 %v1284_v50, %v1784_v11 }
 0x638   :  { %v964_v12 = vmul.f32 %v963_v5, %v1899_v59  ;;  %v965_v28 = vmul.f32 %v960_v25, %v1874_v35 }
 0x63a   :  { %1070 = vmatpush.msra.mxu0 %v964_v12  ;;  %1096 = vmatpush.msra.mxu1 %v965_v28 }
 0x63c   :  { %1071 = vmatpush.msra.mxu0 %v953_v14  ;;  %1097 = vmatpush.msra.mxu1 %v954_v2 }
 0x63d   :  { %1482 = vmatmul.msk.f32.vlgmr.msra.gmra.mxu0 %vm716_vm13, %v2241_v58  ;;  %1485 = vmatmul.msk.f32.vlgmr.msra.gmra.mxu1 %vm716_vm13, %v2241_v58  ;;  %v1266_v45 = vpop.permute.xlu0 %1265 }
 0x63e   :  { %v2261_v10 = vpop.permute.xlu1 %1039 }
 0x645   :  { %1483 = vmatmul.msk.f32.gmra.mxu0 %vm716_vm13, %v2247_v60  ;;  %1486 = vmatmul.msk.f32.gmra.mxu1 %vm716_vm13, %v2247_v60  ;;  %v1268_v43 = vpop.permute.xlu0 %1267 }
 0x646   :  { %v1288_v39 = vpop.permute.xlu1 %1287  ;;  %v1269_v7 = vsel %vm186_vm4, %v1266_v45, %v1268_v43  ;;  %v1273_v61 = vsel %vm186_vm4, %v1268_v43, %v1266_v45 }
 0x647   :  { %v1291_v44 = vsel %vm228_vm5, %v1288_v39, %v1290_v33  ;;  %v1295_v47 = vsel %vm228_vm5, %v1290_v33, %v1288_v39  ;;  %v1274_v3 = vmul.f32 %v1269_v7, %v1797_v19  ;;  %v1275_v46 = vmul.f32 %v1273_v61, %v1800_v20 }
 0x648   :  { %v1296_v63 = vmul.f32 %v1528_v55, %v1291_v44  ;;  %v1297_v8 = vmul.f32 %v1529_v56, %v1295_v47 }
 0x64d   :  { %1484 = vmatmul.msk.f32.gmra.mxu0 %vm716_vm13, %v2253_v30  ;;  %1487 = vmatmul.msk.f32.gmra.mxu1 %vm716_vm13, %v2253_v30  ;;  %v1257_v6 = vpop.permute.xlu0 %1256 }
 0x64e   :  { %v2269_v52 = vpop.permute.xlu1 %1044 }
 0x655   :  { %v1244_v11 = vpop.permute.xlu0 %1243 }
 0x65d   :  { %v1247_v12 = vpop.permute.xlu0 %1246 }
 0x6ba   :  { %v1073_v37 = vpop.f32.mrf.mxu0  ;;  %v1099_v21 = vpop.f32.mrf.mxu1 }
 0x6bb   :  { %v1074_v27 = vadd.f32 %v1073_v37, %v2259_v31  ;;  %v1100_v41 = vadd.f32 %v1099_v21, %v2259_v31  ;;  %v1248_v37 = vsel %vm149_vm1, %v1247_v12, %v1244_v11  ;;  %v1251_v21 = vsel %vm149_vm1, %v1244_v11, %v1247_v12 }
 0x6bc   :  { %v1252_v39 = vmul.f32 %v1251_v21, %v1902_v57 }
 0x6c2   :  { %v1076_v26 = vpop.f32.mrf.mxu0  ;;  %v1102_v40 = vpop.f32.mrf.mxu1 }
 0x6c3   :  { %v1077_v29 = vadd.f32 %v1076_v26, %v2261_v10  ;;  %v1103_v32 = vadd.f32 %v1102_v40, %v2261_v10  ;;  %v1253_v26 = vmul.f32 %v1248_v37, %v1868_v23  ;;  %v1236_v40 = vpop.permute.xlu0 %1235 }
 0x6c5   :  { %1123 = vmatpush.xpose.msra.mxu2 %v1077_v29  ;;  %1143 = vmatpush.xpose.msra.mxu3 %v1103_v32 }
 0x6c8   :  { %1124 = vmatmul.f32.vlgmr.msra.gmra.mxu2 %v1074_v27  ;;  %1144 = vmatmul.f32.vlgmr.msra.gmra.mxu3 %v1100_v41 }
 0x6ca   :  { %v1079_v48 = vpop.f32.mrf.mxu0  ;;  %v1105_v51 = vpop.f32.mrf.mxu1 }
 0x6cb   :  { %v1080_v53 = vadd.f32 %v1079_v48, %v2269_v52  ;;  %v1106_v54 = vadd.f32 %v1105_v51, %v2269_v52  ;;  %v1225_v57 = vpop.permute.xlu0 %1224 }
 0x6cd   :  { %1179 = vmatpush.msrb.mxu2 %v1080_v53  ;;  %1199 = vmatpush.msrb.mxu3 %v1106_v54 }
 0x6cf   :  { %1305 = vmatpush.msra.mxu2 %v1296_v63  ;;  %1331 = vmatpush.msra.mxu3 %v1297_v8 }
 0x6d1   :  { %1306 = vmatpush.msra.mxu2 %v1285_v0  ;;  %1332 = vmatpush.msra.mxu3 %v1286_v4 }
 0x6d3   :  { %1307 = vmatpush.msra.mxu2 %v1274_v3  ;;  %1333 = vmatpush.msra.mxu3 %v1275_v46 }
 0x74b   :  { %v1125_v9 = vpop.f32.mrf.mxu2  ;;  %v1145_v16 = vpop.f32.mrf.mxu3 }
 0x74c   :  { %v1146_v17 = vadd.f32 %v1145_v16, %v1125_v9 }
 0x74e   :  { %v1148_v1 = vmul.f32 0.17677669, %v1146_v17 }
 0x750   :  { %v1150_v25 = vsel %vm1149_vm3, %v1148_v1, -inf }
 0x751   :  { %1151 = vmax.xlane.f32.xlu2 %v1150_v25 }
 0x769   :  { %1254 = vrot.lane.b32.xlu2 %v2175_v62, %s1587_s13  ;;  %s1454_s13 = sshll.u32 %s1594_s1, 4  ;;  %s1455_s13 = int_to_ptr.vmem [resolvable:$true] %s1454_s13 }
 0x771   :  { %1232 = vrot.lane.b32.xlu2 %v2168_v24, %s1592_s0  ;;  %s1456_s0 = sshll.u32 %s2361_s12, 4  ;;  %s1457_s0 = int_to_ptr.hbm [resolvable:$true] %s1456_s0 }
 0x779   :  { %1221 = vrot.lane.b32.xlu2 %v2168_v24, %s1585_s10 }
 0x781   :  { %1213 = vrot.lane.b32.xlu2 %v2175_v62, %s1591_s19 }
 0x7c4   :  { %v1152_v19 = vpop.xlane.xlu2 %1151 }
 0x7c5   :  { %v1153_v20 = vsub.f32 %v1148_v1, %v1152_v19 }
 0x7c7   :  { %v1154_v5 = vmul.f32 1.442695, %v1153_v20 }
 0x7c9   :  { %1520 = vpow2.f32 %v1154_v5 }
 0x7cc   :  { %v1255_v28 = vpop.permute.xlu2 %1254 }
 0x7cd   :  { %v1258_v14 = vsel %vm165_vm2, %v1255_v28, %v1257_v6  ;;  %v1262_v2 = vsel %vm165_vm2, %v1257_v6, %v1255_v28 }
 0x7ce   :  { %v1263_v33 = vmul.f32 %v1258_v14, %v1787_v13  ;;  %v1264_v34 = vmul.f32 %v1262_v2, %v1794_v18 }
 0x7cf   :  { %v1521_v36 = vpop.eup %1520 }
 0x7d0   :  { %1308 = vmatpush.msra.mxu2 %v1263_v33  ;;  %1334 = vmatpush.msra.mxu3 %v1264_v34  ;;  %v1156_v45 = vsel %vm1149_vm3, %v1521_v36, 0.0 }
 0x7d1   :  { %1157 = vadd.xlane.f32.xlu1 %v1156_v45 }
 0x7d2   :  { %1309 = vmatpush.msra.mxu2 %v2175_v62  ;;  %1335 = vmatpush.msra.mxu3 %v2168_v24 }
 0x7d4   :  { %v1233_v13 = vpop.permute.xlu2 %1232  ;;  %1310 = vmatpush.msra.mxu2 %v1252_v39  ;;  %1336 = vmatpush.msra.mxu3 %v1253_v26 }
 0x7d5   :  { %v1237_v18 = vsel %vm128_vm8, %v1236_v40, %v1233_v13  ;;  %v1240_v29 = vsel %vm128_vm8, %v1233_v13, %v1236_v40 }
 0x7d6   :  { %v1241_v32 = vmul.f32 %v1240_v29, %v1910_v15  ;;  %v1242_v27 = vmul.f32 %v1237_v18, %v1879_v38 }
 0x7d8   :  { %1311 = vmatpush.msra.mxu2 %v1241_v32  ;;  %1337 = vmatpush.msra.mxu3 %v1242_v27 }
 0x7dc   :  { %v1222_v23 = vpop.permute.xlu2 %1221 }
 0x7dd   :  { %v1226_v41 = vsel %vm107_vm0, %v1225_v57, %v1222_v23  ;;  %v1229_v62 = vsel %vm107_vm0, %v1222_v23, %v1225_v57 }
 0x7de   :  { %v1230_v43 = vmul.f32 %v1229_v62, %v1899_v59  ;;  %v1231_v44 = vmul.f32 %v1226_v41, %v1874_v35 }
 0x7e0   :  { %1312 = vmatpush.msra.mxu2 %v1230_v43  ;;  %1338 = vmatpush.msra.mxu3 %v1231_v44 }
 0x7e4   :  { %v1214_v48 = vpop.permute.xlu2 %1213 }
 0x7ea   :  { %1209 = vrot.lane.b32.xlu1 %v2168_v24, %s1591_s19 }
 0x844   :  { %v1158_v15 = vpop.xlane.xlu1 %1157 }
 0x845   :  { %1522 = vrcp.f32 %v1158_v15 }
 0x84b   :  { %v1523_v38 = vpop.eup %1522 }
 0x84c   :  { %v1160_v47 = vmul.f32 %v1523_v38, %v1521_v36 }
 0x84e   :  { %1488 = vmatmul.msk.f32.vlgmr.msrb.gmra.mxu2 %vm1149_vm3, %v1160_v47  ;;  %1489 = vmatmul.msk.f32.vlgmr.msrb.gmra.mxu3 %vm1149_vm3, %v1160_v47 }
 0x85c   :  { %v1210_v51 = vpop.permute.xlu1 %1209 }
 0x85d   :  { %v1215_v49 = vsel %vm86_vm7, %v1214_v48, %v1210_v51  ;;  %v1218_v59 = vsel %vm86_vm7, %v1210_v51, %v1214_v48 }
 0x85e   :  { %v1219_v35 = vmul.f32 %v1218_v59, %v1915_v22  ;;  %v1220_v50 = vmul.f32 %v1215_v49, %v1885_v42 }
 0x860   :  { %1313 = vmatpush.msra.mxu2 %v1219_v35  ;;  %1339 = vmatpush.msra.mxu3 %v1220_v50 }
 0x861   :  { %1490 = vmatmul.msk.f32.vlgmr.msra.gmra.mxu2 %vm716_vm13, %v2241_v58  ;;  %1493 = vmatmul.msk.f32.vlgmr.msra.gmra.mxu3 %vm716_vm13, %v2241_v58 }
 0x869   :  { %1491 = vmatmul.msk.f32.gmra.mxu2 %vm716_vm13, %v2247_v60  ;;  %1494 = vmatmul.msk.f32.gmra.mxu3 %vm716_vm13, %v2247_v60 }
 0x871   :  { %1492 = vmatmul.msk.f32.gmra.mxu2 %vm716_vm13, %v2253_v30  ;;  %1495 = vmatmul.msk.f32.gmra.mxu3 %vm716_vm13, %v2253_v30 }
 0x8d1   :  { %v1181_v42 = vpop.f32.mrf.mxu2  ;;  %v1201_v22 = vpop.f32.mrf.mxu3 }
 0x8d2   :  { %v1204_v24 = vmax.f32 %v1181_v42, 0.0  ;;  %v1205_v53 = vmax.f32 %v1201_v22, 0.0 }
 0x8d4   :  { %1206 = vst [vmem:[#allocation5] sm:$0xff] %v1204_v24 }
 0x8d5   :  { %1207 = vst [vmem:[#allocation5 + $0x8] sm:$0xff] %v1205_v53 }
 0x8e4   :  { %v1315_v54 = vpop.f32.mrf.mxu2  ;;  %v1341_v58 = vpop.f32.mrf.mxu3 }
 0x8e5   :  { %v1316_v8 = vadd.f32 %v1315_v54, %v2259_v31  ;;  %v1342_v30 = vadd.f32 %v1341_v58, %v2259_v31 }
 0x8ec   :  { %v1318_v55 = vpop.f32.mrf.mxu2  ;;  %v1344_v63 = vpop.f32.mrf.mxu3 }
 0x8ed   :  { %v1319_v56 = vadd.f32 %v1318_v55, %v2261_v10  ;;  %v1345_v60 = vadd.f32 %v1344_v63, %v2261_v10 }
 0x8ef   :  { %1365 = vmatpush.xpose.msrb.mxu0 %v1319_v56  ;;  %1385 = vmatpush.xpose.msrb.mxu1 %v1345_v60 }
 0x8f2   :  { %1366 = vmatmul.f32.vlgmr.msrb.gmra.mxu0 %v1316_v8  ;;  %1386 = vmatmul.f32.vlgmr.msrb.gmra.mxu1 %v1342_v30 }
 0x8f4   :  { %v1321_v7 = vpop.f32.mrf.mxu2  ;;  %v1347_v61 = vpop.f32.mrf.mxu3 }
 0x8f5   :  { %v1322_v0 = vadd.f32 %v1321_v7, %v2269_v52  ;;  %v1348_v4 = vadd.f32 %v1347_v61, %v2269_v52 }
 0x8f7   :  { %1420 = vmatpush.msra.mxu0 %v1322_v0  ;;  %1440 = vmatpush.msra.mxu1 %v1348_v4 }
 0x96f   :  { %v1367_v3 = vpop.f32.mrf.mxu0  ;;  %v1387_v46 = vpop.f32.mrf.mxu1 }
 0x970   :  { %v1388_v9 = vadd.f32 %v1387_v46, %v1367_v3 }
 0x972   :  { %v1390_v10 = vmul.f32 0.17677669, %v1388_v9 }
 0x974   :  { %v1391_v16 = vsel %vm1149_vm3, %v1390_v10, -inf }
 0x975   :  { %1392 = vmax.xlane.f32.xlu0 %v1391_v16 }
 0x9e8   :  { %v1393_v17 = vpop.xlane.xlu0 %1392 }
 0x9e9   :  { %v1394_v1 = vsub.f32 %v1390_v10, %v1393_v17 }
 0x9eb   :  { %v1395_v31 = vmul.f32 1.442695, %v1394_v1 }
 0x9ed   :  { %1524 = vpow2.f32 %v1395_v31 }
 0x9f3   :  { %v1525_v25 = vpop.eup %1524 }
 0x9f4   :  { %v1397_v6 = vsel %vm1149_vm3, %v1525_v25, 0.0 }
 0x9f5   :  { %1398 = vadd.xlane.f32.xlu1 %v1397_v6 }
 0xa68   :  { %v1399_v11 = vpop.xlane.xlu1 %1398 }
 0xa69   :  { %1526 = vrcp.f32 %v1399_v11 }
 0xa6f   :  { %v1527_v52 = vpop.eup %1526 }
 0xa70   :  { %v1401_v19 = vmul.f32 %v1527_v52, %v1525_v25 }
 0xa72   :  { %1496 = vmatmul.msk.f32.vlgmr.msra.gmra.mxu0 %vm1149_vm3, %v1401_v19  ;;  %1497 = vmatmul.msk.f32.vlgmr.msra.gmra.mxu1 %vm1149_vm3, %v1401_v19 }
 0xaef   :  { %v1422_v20 = vpop.f32.mrf.mxu0  ;;  %v1442_v5 = vpop.f32.mrf.mxu1 }
 0xaf0   :  { %v1445_v12 = vmax.f32 %v1422_v20, 0.0  ;;  %v1446_v28 = vmax.f32 %v1442_v5, 0.0 }
 0xaf2   :  { %1448 = vst [vmem:[#allocation5 + $0x10] sm:$0xff] %v1445_v12 }
 0xaf3   :  { %1449 = vst [vmem:[#allocation5 + $0x18] sm:$0xff] %v1446_v28 }
 0xaf4   :  { %1462 = dma.vmem_to_hbm [thread:$0]  %s1455_s13, 512, %s1457_s0, [#allocation4], %s1595_s3, %s1595_s3, %s1585_s10  }
 0xaf5   :  { %1580 = dma.done.wait [#allocation4], 512  }
 0xaf6   :  { %1581 = vsyncadd [#allocation4], 4294966784 }
 0xaf7   :  { %1467 = vsyncpa [#allocation3], 1 }
 0xaf8   :  { %1468 = vsyncpa [#allocation4], 1 }

</bundles_post_ra>
